<compile_context>
chip_gen: v7x
topology: tpu7x:2x2x1
jax: 0.10.0
libtpu: 0.0.40
codegen_flags: <defaults>
</compile_context>

<pallas_src>
import functools
import math

import jax
import jax.numpy as jnp
import numpy as np
from jax.experimental import pallas as pl
from jax.experimental.pallas import tpu as pltpu

_BN_EPS = 1e-5


# ------------------------------ fused kernel --------------------------------

def _ghost_bottleneck_kernel(
    x_ref, mask_ref,
    g1_pw_w, g1_pw_sc, g1_pw_sh, g1_dw_w, g1_dw_sc, g1_dw_sh,
    se_wr, se_br, se_we, se_be,
    g2_pw_w, g2_pw_sc, g2_pw_sh, g2_dw_w, g2_dw_sc, g2_dw_sh,
    o_ref, mid_ref, *, H, W):
  HW = H * W

  def pw(src_ref, w_ref, sc_ref, sh_ref, relu):
    # 1x1 conv as a VPU FMA loop over input channels.
    # w_ref: (cin, cout, 1); src_ref: (cin, HW)  -> (cout, HW)
    cin, cout, _ = w_ref.shape
    acc = jnp.zeros((cout, HW), jnp.float32)
    for c in range(cin):
      acc = acc + w_ref[c] * src_ref[pl.ds(c, 1), :].astype(jnp.float32)
    y = acc * sc_ref[...] + sh_ref[...]
    return jnp.maximum(y, 0.0) if relu else y

  def dw3x3(z, taps_ref, sc_ref, sh_ref, relu):
    # Depthwise 3x3 (stride 1, SAME) on the flattened (C, H*W) layout:
    # lane roll per tap + boundary mask.  taps_ref: (9, C, 1).
    acc = jnp.zeros_like(z)
    t = 0
    for oh in (-1, 0, 1):
      for ow in (-1, 0, 1):
        off = oh * W + ow
        zt = z if off == 0 else jnp.roll(z, -off, axis=1)
        acc = acc + zt * taps_ref[t] * mask_ref[t]
        t += 1
    y = acc * sc_ref[...] + sh_ref[...]
    return jnp.maximum(y, 0.0) if relu else y

  # ---- ghost1 (relu=True): both halves of z1 hold the primary-conv output,
  #      dw pass applies identity taps on rows [0:init_c) and the real cheap
  #      op on rows [init_c:2*init_c) -> mid == concat([x1, x2], channel).
  z1 = pw(x_ref, g1_pw_w, g1_pw_sc, g1_pw_sh, relu=True)      # (Cmid, HW)
  mid = dw3x3(z1, g1_dw_w, g1_dw_sc, g1_dw_sh, relu=True)     # (Cmid, HW)

  # ---- Squeeze-Excite (channels stay on the sublane axis throughout).
  pooled = jnp.mean(mid, axis=1, keepdims=True)               # (Cmid, 1)
  gate_pre = se_be[...]                                       # (Cmid, 1)
  for j in range(se_wr.shape[0]):
    rj = jnp.sum(se_wr[j] * pooled, axis=0, keepdims=True) + se_br[j]  # (1,1)
    rj = jnp.maximum(rj, 0.0)
    gate_pre = gate_pre + se_we[j] * rj
  gate = jnp.clip(gate_pre + 3.0, 0.0, 6.0) * (1.0 / 6.0)     # hard_sigmoid
  mid_ref[...] = mid * gate                                   # VMEM scratch

  # ---- ghost2 (relu=False), same concat-free trick.
  z2 = pw(mid_ref, g2_pw_w, g2_pw_sc, g2_pw_sh, relu=False)   # (Cout, HW)
  y = dw3x3(z2, g2_dw_w, g2_dw_sc, g2_dw_sh, relu=False)      # (Cout, HW)

  # ---- identity shortcut fused into the store epilogue.
  o_ref[...] = (y + x_ref[...].astype(jnp.float32)).astype(o_ref.dtype)


# ------------------------- host-side packing / wrapper ----------------------

def _make_tap_masks(H, W):
  m = np.zeros((9, 1, H * W), np.float32)
  t = 0
  for oh in (-1, 0, 1):
    for ow in (-1, 0, 1):
      g = np.zeros((H, W), np.float32)
      g[max(0, -oh):H - max(0, oh), max(0, -ow):W - max(0, ow)] = 1.0
      m[t, 0] = g.reshape(-1)
      t += 1
  return jnp.asarray(m)


def _pack_ghost(p):
  """Logical ghost-module params -> fused-kernel format (concat-free)."""
  pw_w = p["pw_w"]                      # (inp, init_c)
  c = pw_w.shape[1]
  pw_cols = jnp.concatenate([pw_w, pw_w], axis=1)[:, :, None]          # (inp, 2c, 1)
  pw_sc = jnp.tile(p["pw_scale"], 2)[:, None]                          # (2c, 1)
  pw_sh = jnp.tile(p["pw_shift"], 2)[:, None]
  ident = np.zeros((9, c), np.float32)
  ident[4, :] = 1.0                                                    # center tap
  real = p["dw_w"].reshape(9, c)
  dw_taps = jnp.concatenate([jnp.asarray(ident), real], axis=1)[:, :, None]  # (9, 2c, 1)
  dw_sc = jnp.concatenate([jnp.ones((c,), jnp.float32), p["dw_scale"]])[:, None]
  dw_sh = jnp.concatenate([jnp.zeros((c,), jnp.float32), p["dw_shift"]])[:, None]
  return (pw_cols, pw_sc, pw_sh, dw_taps, dw_sc, dw_sh)


def _pack_se(se):
  wr_cols = jnp.transpose(se["wr"])[:, :, None]    # (R, Cmid, 1)
  br = se["br"][:, None, None]                     # (R, 1, 1)
  we_cols = se["we"][:, :, None]                   # (R, Cmid, 1)
  be = se["be"][:, None]                           # (Cmid, 1)
  return (wr_cols, br, we_cols, be)


def ghost_bottleneck_fwd(x, params):
  """x: (N, Cin, H, W) NCHW, stride=1, in_chs == out_chs, SE enabled."""
  N, Cin, H, W = x.shape
  HW = H * W
  Cmid = 2 * params["ghost1"]["pw_w"].shape[1]
  Cout = params["ghost2"]["oup"]
  assert Cin == Cout, "fused kernel implements the identity-shortcut config"
  assert params["se"] is not None

  g1 = _pack_ghost(params["ghost1"])
  se = _pack_se(params["se"])
  g2 = _pack_ghost(params["ghost2"])
  mask = _make_tap_masks(H, W)
  weights = (*g1, *se, *g2)

  def const_spec(a):
    nd = a.ndim
    return pl.BlockSpec(a.shape, lambda n, _nd=nd: (0,) * _nd)

  out = pl.pallas_call(
      functools.partial(_ghost_bottleneck_kernel, H=H, W=W),
      out_shape=jax.ShapeDtypeStruct((N, Cout, HW), x.dtype),
      grid=(N,),
      in_specs=[pl.BlockSpec((None, Cin, HW), lambda n: (n, 0, 0)),
                const_spec(mask)] + [const_spec(w) for w in weights],
      out_specs=pl.BlockSpec((None, Cout, HW), lambda n: (n, 0, 0)),
      scratch_shapes=[pltpu.VMEM((Cmid, HW), jnp.float32)],
      compiler_params=pltpu.CompilerParams(dimension_semantics=("parallel",)),
  )(x.reshape(N, Cin, HW), mask, *weights)
  return out.reshape(N, Cout, H, W)


# --------------------------- parameter creation ------------------------------

def _make_divisible(v, divisor, min_value=None):
  if min_value is None:
    min_value = divisor
  new_v = max(min_value, int(v + divisor / 2) // divisor * divisor)
  if new_v < 0.9 * v:
    new_v += divisor
  return new_v


def _bn_fold(key, c):
  k1, k2, k3, k4 = jax.random.split(key, 4)
  gamma = jax.random.uniform(k1, (c,), jnp.float32, 0.5, 1.5)
  beta = 0.1 * jax.random.normal(k2, (c,), jnp.float32)
  mean = 0.1 * jax.random.normal(k3, (c,), jnp.float32)
  var = jax.random.uniform(k4, (c,), jnp.float32, 0.5, 1.5)
  scale = gamma / jnp.sqrt(var + _BN_EPS)
  shift = beta - mean * scale
  return scale, shift


def make_ghost_params(key, inp, oup, ratio=2, dw_size=3):
  init_c = math.ceil(oup / ratio)
  new_c = init_c * (ratio - 1)
  assert new_c == init_c, "only ratio=2 supported"
  k1, k2, k3, k4 = jax.random.split(key, 4)
  pw_w = 0.1 * jax.random.normal(k1, (inp, init_c), jnp.float32)
  pw_scale, pw_shift = _bn_fold(k2, init_c)
  dw_w = 0.1 * jax.random.normal(k3, (dw_size, dw_size, init_c), jnp.float32)
  dw_scale, dw_shift = _bn_fold(k4, new_c)
  return dict(pw_w=pw_w, pw_scale=pw_scale, pw_shift=pw_shift,
              dw_w=dw_w, dw_scale=dw_scale, dw_shift=dw_shift, oup=oup)


def make_se_params(key, in_chs, se_ratio=0.25, divisor=4):
  reduced = _make_divisible(in_chs * se_ratio, divisor)
  k1, k2, k3, k4 = jax.random.split(key, 4)
  wr = 0.2 * jax.random.normal(k1, (in_chs, reduced), jnp.float32)
  br = 0.1 * jax.random.normal(k2, (reduced,), jnp.float32)
  we = 0.2 * jax.random.normal(k3, (reduced, in_chs), jnp.float32)
  be = 0.1 * jax.random.normal(k4, (in_chs,), jnp.float32)
  return dict(wr=wr, br=br, we=we, be=be)


# ----------------------------- pure-JAX reference ----------------------------

def _ref_pw(x, w, scale, shift, relu):
  y = jnp.einsum("nchw,cd->ndhw", x, w, precision=jax.lax.Precision.HIGHEST)
  y = y * scale[None, :, None, None] + shift[None, :, None, None]
  return jnp.maximum(y, 0.0) if relu else y


def _ref_dw(x, w, scale, shift, relu):
  N, C, H, W = x.shape
  K = w.shape[0]
  p = K // 2
  xp = jnp.pad(x, ((0, 0), (0, 0), (p, p), (p, p)))
  acc = jnp.zeros_like(x)
  for dh in range(K):
    for dwi in range(K):
      acc = acc + xp[:, :, dh:dh + H, dwi:dwi + W] * w[dh, dwi, :][None, :, None, None]
  y = acc * scale[None, :, None, None] + shift[None, :, None, None]
  return jnp.maximum(y, 0.0) if relu else y


def _ref_ghost(x, p, relu):
  x1 = _ref_pw(x, p["pw_w"], p["pw_scale"], p["pw_shift"], relu)
  x2 = _ref_dw(x1, p["dw_w"], p["dw_scale"], p["dw_shift"], relu)
  return jnp.concatenate([x1, x2], axis=1)[:, :p["oup"]]


def _ref_se(x, se):
  pooled = jnp.mean(x, axis=(2, 3))
  r = jnp.maximum(pooled @ se["wr"] + se["br"], 0.0)
  e = r @ se["we"] + se["be"]
  gate = jnp.clip(e + 3.0, 0.0, 6.0) / 6.0
  return x * gate[:, :, None, None]


def _ref_forward(x, params):
  y = _ref_ghost(x, params["ghost1"], True)
  if params["se"] is not None:
    y = _ref_se(y, params["se"])
  y = _ref_ghost(y, params["ghost2"], False)
  return y + x


# ----------------------------------- main ------------------------------------

if __name__ == "__main__":
  in_chs, mid_chs, out_chs = 8, 16, 8     # stride=1, identity shortcut
  N, H, W = 2, 16, 16
  se_ratio = 0.25

  root = jax.random.PRNGKey(0)
  kx, kg1, kse, kg2 = jax.random.split(root, 4)
  x = jax.random.normal(kx, (N, in_chs, H, W), jnp.float32)   # NCHW

  params = dict(
      ghost1=make_ghost_params(kg1, in_chs, mid_chs),
      se=make_se_params(kse, mid_chs, se_ratio=se_ratio),
      ghost2=make_ghost_params(kg2, mid_chs, out_chs),
  )

  out = jax.block_until_ready(ghost_bottleneck_fwd(x, params))
  ref = jax.block_until_ready(_ref_forward(x, params))
  np.testing.assert_allclose(np.asarray(out), np.asarray(ref), rtol=1e-3, atol=1e-3)
  print("KERNEL_OK")
</pallas_src>

<mosaic_0001>
module attributes {stable_mosaic.version = 11 : i64} {
  func.func @_ghost_bottleneck_kernel(%arg0: i32, %arg1: memref<1x8x256xf32, #tpu.memory_space<vmem>>, %arg2: memref<9x1x256xf32, #tpu.memory_space<vmem>>, %arg3: memref<8x16x1xf32, #tpu.memory_space<vmem>>, %arg4: memref<16x1xf32, #tpu.memory_space<vmem>>, %arg5: memref<16x1xf32, #tpu.memory_space<vmem>>, %arg6: memref<9x16x1xf32, #tpu.memory_space<vmem>>, %arg7: memref<16x1xf32, #tpu.memory_space<vmem>>, %arg8: memref<16x1xf32, #tpu.memory_space<vmem>>, %arg9: memref<4x16x1xf32, #tpu.memory_space<vmem>>, %arg10: memref<4x1x1xf32, #tpu.memory_space<vmem>>, %arg11: memref<4x16x1xf32, #tpu.memory_space<vmem>>, %arg12: memref<16x1xf32, #tpu.memory_space<vmem>>, %arg13: memref<16x8x1xf32, #tpu.memory_space<vmem>>, %arg14: memref<8x1xf32, #tpu.memory_space<vmem>>, %arg15: memref<8x1xf32, #tpu.memory_space<vmem>>, %arg16: memref<9x8x1xf32, #tpu.memory_space<vmem>>, %arg17: memref<8x1xf32, #tpu.memory_space<vmem>>, %arg18: memref<8x1xf32, #tpu.memory_space<vmem>>, %arg19: memref<1x8x256xf32, #tpu.memory_space<vmem>>, %arg20: memref<16x256xf32, #tpu.memory_space<vmem>>) attributes {dimension_semantics = [#tpu.dimension_semantics<parallel>], iteration_bounds = array<i64: 2>, scalar_prefetch = 0 : i64, scratch_operands = 1 : i64, tpu.core_type = #tpu.core_type<tc>, window_params = [{transform_indices = @transform_0, window_bounds = array<i64: 1, 8, 256>}, {pipeline_mode = #tpu.pipeline_mode<synchronous>, transform_indices = @transform_1, window_bounds = array<i64: 9, 1, 256>}, {pipeline_mode = #tpu.pipeline_mode<synchronous>, transform_indices = @transform_2, window_bounds = array<i64: 8, 16, 1>}, {pipeline_mode = #tpu.pipeline_mode<synchronous>, transform_indices = @transform_3, window_bounds = array<i64: 16, 1>}, {pipeline_mode = #tpu.pipeline_mode<synchronous>, transform_indices = @transform_4, window_bounds = array<i64: 16, 1>}, {pipeline_mode = #tpu.pipeline_mode<synchronous>, transform_indices = @transform_5, window_bounds = array<i64: 9, 16, 1>}, {pipeline_mode = #tpu.pipeline_mode<synchronous>, transform_indices = @transform_6, window_bounds = array<i64: 16, 1>}, {pipeline_mode = #tpu.pipeline_mode<synchronous>, transform_indices = @transform_7, window_bounds = array<i64: 16, 1>}, {pipeline_mode = #tpu.pipeline_mode<synchronous>, transform_indices = @transform_8, window_bounds = array<i64: 4, 16, 1>}, {pipeline_mode = #tpu.pipeline_mode<synchronous>, transform_indices = @transform_9, window_bounds = array<i64: 4, 1, 1>}, {pipeline_mode = #tpu.pipeline_mode<synchronous>, transform_indices = @transform_10, window_bounds = array<i64: 4, 16, 1>}, {pipeline_mode = #tpu.pipeline_mode<synchronous>, transform_indices = @transform_11, window_bounds = array<i64: 16, 1>}, {pipeline_mode = #tpu.pipeline_mode<synchronous>, transform_indices = @transform_12, window_bounds = array<i64: 16, 8, 1>}, {pipeline_mode = #tpu.pipeline_mode<synchronous>, transform_indices = @transform_13, window_bounds = array<i64: 8, 1>}, {pipeline_mode = #tpu.pipeline_mode<synchronous>, transform_indices = @transform_14, window_bounds = array<i64: 8, 1>}, {pipeline_mode = #tpu.pipeline_mode<synchronous>, transform_indices = @transform_15, window_bounds = array<i64: 9, 8, 1>}, {pipeline_mode = #tpu.pipeline_mode<synchronous>, transform_indices = @transform_16, window_bounds = array<i64: 8, 1>}, {pipeline_mode = #tpu.pipeline_mode<synchronous>, transform_indices = @transform_17, window_bounds = array<i64: 8, 1>}, {transform_indices = @transform_18, window_bounds = array<i64: 1, 8, 256>}]} {
    %cst = arith.constant 0.000000e+00 : f32
    %0 = vector.broadcast %cst : f32 to vector<16x256xf32>
    %c0 = arith.constant 0 : index
    %c0_0 = arith.constant 0 : index
    %c0_1 = arith.constant 0 : index
    %1 = vector.load %arg3[%c0, %c0_0, %c0_1] : memref<8x16x1xf32, #tpu.memory_space<vmem>>, vector<1x16x1xf32>
    %2 = vector.shape_cast %1 : vector<1x16x1xf32> to vector<16x1xf32>
    %c0_2 = arith.constant 0 : index
    %c0_3 = arith.constant 0 : index
    %c0_4 = arith.constant 0 : index
    %3 = vector.load %arg1[%c0_2, %c0_3, %c0_4] : memref<1x8x256xf32, #tpu.memory_space<vmem>>, vector<1x1x256xf32>
    %4 = vector.shape_cast %3 : vector<1x1x256xf32> to vector<1x256xf32>
    %5 = vector.broadcast %2 : vector<16x1xf32> to vector<16x256xf32>
    %6 = vector.broadcast %4 : vector<1x256xf32> to vector<16x256xf32>
    %7 = arith.mulf %5, %6 : vector<16x256xf32>
    %8 = arith.addf %0, %7 : vector<16x256xf32>
    %c1 = arith.constant 1 : index
    %c0_5 = arith.constant 0 : index
    %c0_6 = arith.constant 0 : index
    %9 = vector.load %arg3[%c1, %c0_5, %c0_6] : memref<8x16x1xf32, #tpu.memory_space<vmem>>, vector<1x16x1xf32>
    %10 = vector.shape_cast %9 : vector<1x16x1xf32> to vector<16x1xf32>
    %c0_7 = arith.constant 0 : index
    %c1_8 = arith.constant 1 : index
    %c0_9 = arith.constant 0 : index
    %11 = vector.load %arg1[%c0_7, %c1_8, %c0_9] : memref<1x8x256xf32, #tpu.memory_space<vmem>>, vector<1x1x256xf32>
    %12 = vector.shape_cast %11 : vector<1x1x256xf32> to vector<1x256xf32>
    %13 = vector.broadcast %10 : vector<16x1xf32> to vector<16x256xf32>
    %14 = vector.broadcast %12 : vector<1x256xf32> to vector<16x256xf32>
    %15 = arith.mulf %13, %14 : vector<16x256xf32>
    %16 = arith.addf %8, %15 : vector<16x256xf32>
    %c2 = arith.constant 2 : index
    %c0_10 = arith.constant 0 : index
    %c0_11 = arith.constant 0 : index
    %17 = vector.load %arg3[%c2, %c0_10, %c0_11] : memref<8x16x1xf32, #tpu.memory_space<vmem>>, vector<1x16x1xf32>
    %18 = vector.shape_cast %17 : vector<1x16x1xf32> to vector<16x1xf32>
    %c0_12 = arith.constant 0 : index
    %c2_13 = arith.constant 2 : index
    %c0_14 = arith.constant 0 : index
    %19 = vector.load %arg1[%c0_12, %c2_13, %c0_14] : memref<1x8x256xf32, #tpu.memory_space<vmem>>, vector<1x1x256xf32>
    %20 = vector.shape_cast %19 : vector<1x1x256xf32> to vector<1x256xf32>
    %21 = vector.broadcast %18 : vector<16x1xf32> to vector<16x256xf32>
    %22 = vector.broadcast %20 : vector<1x256xf32> to vector<16x256xf32>
    %23 = arith.mulf %21, %22 : vector<16x256xf32>
    %24 = arith.addf %16, %23 : vector<16x256xf32>
    %c3 = arith.constant 3 : index
    %c0_15 = arith.constant 0 : index
    %c0_16 = arith.constant 0 : index
    %25 = vector.load %arg3[%c3, %c0_15, %c0_16] : memref<8x16x1xf32, #tpu.memory_space<vmem>>, vector<1x16x1xf32>
    %26 = vector.shape_cast %25 : vector<1x16x1xf32> to vector<16x1xf32>
    %c0_17 = arith.constant 0 : index
    %c3_18 = arith.constant 3 : index
    %c0_19 = arith.constant 0 : index
    %27 = vector.load %arg1[%c0_17, %c3_18, %c0_19] : memref<1x8x256xf32, #tpu.memory_space<vmem>>, vector<1x1x256xf32>
    %28 = vector.shape_cast %27 : vector<1x1x256xf32> to vector<1x256xf32>
    %29 = vector.broadcast %26 : vector<16x1xf32> to vector<16x256xf32>
    %30 = vector.broadcast %28 : vector<1x256xf32> to vector<16x256xf32>
    %31 = arith.mulf %29, %30 : vector<16x256xf32>
    %32 = arith.addf %24, %31 : vector<16x256xf32>
    %c4 = arith.constant 4 : index
    %c0_20 = arith.constant 0 : index
    %c0_21 = arith.constant 0 : index
    %33 = vector.load %arg3[%c4, %c0_20, %c0_21] : memref<8x16x1xf32, #tpu.memory_space<vmem>>, vector<1x16x1xf32>
    %34 = vector.shape_cast %33 : vector<1x16x1xf32> to vector<16x1xf32>
    %c0_22 = arith.constant 0 : index
    %c4_23 = arith.constant 4 : index
    %c0_24 = arith.constant 0 : index
    %35 = vector.load %arg1[%c0_22, %c4_23, %c0_24] : memref<1x8x256xf32, #tpu.memory_space<vmem>>, vector<1x1x256xf32>
    %36 = vector.shape_cast %35 : vector<1x1x256xf32> to vector<1x256xf32>
    %37 = vector.broadcast %34 : vector<16x1xf32> to vector<16x256xf32>
    %38 = vector.broadcast %36 : vector<1x256xf32> to vector<16x256xf32>
    %39 = arith.mulf %37, %38 : vector<16x256xf32>
    %40 = arith.addf %32, %39 : vector<16x256xf32>
    %c5 = arith.constant 5 : index
    %c0_25 = arith.constant 0 : index
    %c0_26 = arith.constant 0 : index
    %41 = vector.load %arg3[%c5, %c0_25, %c0_26] : memref<8x16x1xf32, #tpu.memory_space<vmem>>, vector<1x16x1xf32>
    %42 = vector.shape_cast %41 : vector<1x16x1xf32> to vector<16x1xf32>
    %c0_27 = arith.constant 0 : index
    %c5_28 = arith.constant 5 : index
    %c0_29 = arith.constant 0 : index
    %43 = vector.load %arg1[%c0_27, %c5_28, %c0_29] : memref<1x8x256xf32, #tpu.memory_space<vmem>>, vector<1x1x256xf32>
    %44 = vector.shape_cast %43 : vector<1x1x256xf32> to vector<1x256xf32>
    %45 = vector.broadcast %42 : vector<16x1xf32> to vector<16x256xf32>
    %46 = vector.broadcast %44 : vector<1x256xf32> to vector<16x256xf32>
    %47 = arith.mulf %45, %46 : vector<16x256xf32>
    %48 = arith.addf %40, %47 : vector<16x256xf32>
    %c6 = arith.constant 6 : index
    %c0_30 = arith.constant 0 : index
    %c0_31 = arith.constant 0 : index
    %49 = vector.load %arg3[%c6, %c0_30, %c0_31] : memref<8x16x1xf32, #tpu.memory_space<vmem>>, vector<1x16x1xf32>
    %50 = vector.shape_cast %49 : vector<1x16x1xf32> to vector<16x1xf32>
    %c0_32 = arith.constant 0 : index
    %c6_33 = arith.constant 6 : index
    %c0_34 = arith.constant 0 : index
    %51 = vector.load %arg1[%c0_32, %c6_33, %c0_34] : memref<1x8x256xf32, #tpu.memory_space<vmem>>, vector<1x1x256xf32>
    %52 = vector.shape_cast %51 : vector<1x1x256xf32> to vector<1x256xf32>
    %53 = vector.broadcast %50 : vector<16x1xf32> to vector<16x256xf32>
    %54 = vector.broadcast %52 : vector<1x256xf32> to vector<16x256xf32>
    %55 = arith.mulf %53, %54 : vector<16x256xf32>
    %56 = arith.addf %48, %55 : vector<16x256xf32>
    %c7 = arith.constant 7 : index
    %c0_35 = arith.constant 0 : index
    %c0_36 = arith.constant 0 : index
    %57 = vector.load %arg3[%c7, %c0_35, %c0_36] : memref<8x16x1xf32, #tpu.memory_space<vmem>>, vector<1x16x1xf32>
    %58 = vector.shape_cast %57 : vector<1x16x1xf32> to vector<16x1xf32>
    %c0_37 = arith.constant 0 : index
    %c7_38 = arith.constant 7 : index
    %c0_39 = arith.constant 0 : index
    %59 = vector.load %arg1[%c0_37, %c7_38, %c0_39] : memref<1x8x256xf32, #tpu.memory_space<vmem>>, vector<1x1x256xf32>
    %60 = vector.shape_cast %59 : vector<1x1x256xf32> to vector<1x256xf32>
    %61 = vector.broadcast %58 : vector<16x1xf32> to vector<16x256xf32>
    %62 = vector.broadcast %60 : vector<1x256xf32> to vector<16x256xf32>
    %63 = arith.mulf %61, %62 : vector<16x256xf32>
    %64 = arith.addf %56, %63 : vector<16x256xf32>
    %c0_40 = arith.constant 0 : index
    %c0_41 = arith.constant 0 : index
    %65 = vector.load %arg4[%c0_40, %c0_41] : memref<16x1xf32, #tpu.memory_space<vmem>>, vector<16x1xf32>
    %66 = vector.broadcast %65 : vector<16x1xf32> to vector<16x256xf32>
    %67 = arith.mulf %64, %66 : vector<16x256xf32>
    %c0_42 = arith.constant 0 : index
    %c0_43 = arith.constant 0 : index
    %68 = vector.load %arg5[%c0_42, %c0_43] : memref<16x1xf32, #tpu.memory_space<vmem>>, vector<16x1xf32>
    %69 = vector.broadcast %68 : vector<16x1xf32> to vector<16x256xf32>
    %70 = arith.addf %67, %69 : vector<16x256xf32>
    %cst_44 = arith.constant 0.000000e+00 : f32
    %71 = vector.broadcast %cst_44 : f32 to vector<16x256xf32>
    %72 = arith.maximumf %70, %71 : vector<16x256xf32>
    %cst_45 = arith.constant 0.000000e+00 : f32
    %73 = vector.broadcast %cst_45 : f32 to vector<16x256xf32>
    %74 = vector.extract_strided_slice %72 {offsets = [0, 239], sizes = [16, 17], strides = [1, 1]} : vector<16x256xf32> to vector<16x17xf32>
    %75 = vector.extract_strided_slice %72 {offsets = [0, 0], sizes = [16, 239], strides = [1, 1]} : vector<16x256xf32> to vector<16x239xf32>
    %76 = tpu.concatenate %74, %75 in 1 : vector<16x17xf32>, vector<16x239xf32> -> vector<16x256xf32>
    %c0_46 = arith.constant 0 : index
    %c0_47 = arith.constant 0 : index
    %c0_48 = arith.constant 0 : index
    %77 = vector.load %arg6[%c0_46, %c0_47, %c0_48] : memref<9x16x1xf32, #tpu.memory_space<vmem>>, vector<1x16x1xf32>
    %78 = vector.shape_cast %77 : vector<1x16x1xf32> to vector<16x1xf32>
    %79 = vector.broadcast %78 : vector<16x1xf32> to vector<16x256xf32>
    %80 = arith.mulf %76, %79 : vector<16x256xf32>
    %c0_49 = arith.constant 0 : index
    %c0_50 = arith.constant 0 : index
    %c0_51 = arith.constant 0 : index
    %81 = vector.load %arg2[%c0_49, %c0_50, %c0_51] : memref<9x1x256xf32, #tpu.memory_space<vmem>>, vector<1x1x256xf32>
    %82 = vector.shape_cast %81 : vector<1x1x256xf32> to vector<1x256xf32>
    %83 = vector.broadcast %82 : vector<1x256xf32> to vector<16x256xf32>
    %84 = arith.mulf %80, %83 : vector<16x256xf32>
    %85 = arith.addf %73, %84 : vector<16x256xf32>
    %86 = vector.extract_strided_slice %72 {offsets = [0, 240], sizes = [16, 16], strides = [1, 1]} : vector<16x256xf32> to vector<16x16xf32>
    %87 = vector.extract_strided_slice %72 {offsets = [0, 0], sizes = [16, 240], strides = [1, 1]} : vector<16x256xf32> to vector<16x240xf32>
    %88 = tpu.concatenate %86, %87 in 1 : vector<16x16xf32>, vector<16x240xf32> -> vector<16x256xf32>
    %c1_52 = arith.constant 1 : index
    %c0_53 = arith.constant 0 : index
    %c0_54 = arith.constant 0 : index
    %89 = vector.load %arg6[%c1_52, %c0_53, %c0_54] : memref<9x16x1xf32, #tpu.memory_space<vmem>>, vector<1x16x1xf32>
    %90 = vector.shape_cast %89 : vector<1x16x1xf32> to vector<16x1xf32>
    %91 = vector.broadcast %90 : vector<16x1xf32> to vector<16x256xf32>
    %92 = arith.mulf %88, %91 : vector<16x256xf32>
    %c1_55 = arith.constant 1 : index
    %c0_56 = arith.constant 0 : index
    %c0_57 = arith.constant 0 : index
    %93 = vector.load %arg2[%c1_55, %c0_56, %c0_57] : memref<9x1x256xf32, #tpu.memory_space<vmem>>, vector<1x1x256xf32>
    %94 = vector.shape_cast %93 : vector<1x1x256xf32> to vector<1x256xf32>
    %95 = vector.broadcast %94 : vector<1x256xf32> to vector<16x256xf32>
    %96 = arith.mulf %92, %95 : vector<16x256xf32>
    %97 = arith.addf %85, %96 : vector<16x256xf32>
    %98 = vector.extract_strided_slice %72 {offsets = [0, 241], sizes = [16, 15], strides = [1, 1]} : vector<16x256xf32> to vector<16x15xf32>
    %99 = vector.extract_strided_slice %72 {offsets = [0, 0], sizes = [16, 241], strides = [1, 1]} : vector<16x256xf32> to vector<16x241xf32>
    %100 = tpu.concatenate %98, %99 in 1 : vector<16x15xf32>, vector<16x241xf32> -> vector<16x256xf32>
    %c2_58 = arith.constant 2 : index
    %c0_59 = arith.constant 0 : index
    %c0_60 = arith.constant 0 : index
    %101 = vector.load %arg6[%c2_58, %c0_59, %c0_60] : memref<9x16x1xf32, #tpu.memory_space<vmem>>, vector<1x16x1xf32>
    %102 = vector.shape_cast %101 : vector<1x16x1xf32> to vector<16x1xf32>
    %103 = vector.broadcast %102 : vector<16x1xf32> to vector<16x256xf32>
    %104 = arith.mulf %100, %103 : vector<16x256xf32>
    %c2_61 = arith.constant 2 : index
    %c0_62 = arith.constant 0 : index
    %c0_63 = arith.constant 0 : index
    %105 = vector.load %arg2[%c2_61, %c0_62, %c0_63] : memref<9x1x256xf32, #tpu.memory_space<vmem>>, vector<1x1x256xf32>
    %106 = vector.shape_cast %105 : vector<1x1x256xf32> to vector<1x256xf32>
    %107 = vector.broadcast %106 : vector<1x256xf32> to vector<16x256xf32>
    %108 = arith.mulf %104, %107 : vector<16x256xf32>
    %109 = arith.addf %97, %108 : vector<16x256xf32>
    %110 = vector.extract_strided_slice %72 {offsets = [0, 255], sizes = [16, 1], strides = [1, 1]} : vector<16x256xf32> to vector<16x1xf32>
    %111 = vector.extract_strided_slice %72 {offsets = [0, 0], sizes = [16, 255], strides = [1, 1]} : vector<16x256xf32> to vector<16x255xf32>
    %112 = tpu.concatenate %110, %111 in 1 : vector<16x1xf32>, vector<16x255xf32> -> vector<16x256xf32>
    %c3_64 = arith.constant 3 : index
    %c0_65 = arith.constant 0 : index
    %c0_66 = arith.constant 0 : index
    %113 = vector.load %arg6[%c3_64, %c0_65, %c0_66] : memref<9x16x1xf32, #tpu.memory_space<vmem>>, vector<1x16x1xf32>
    %114 = vector.shape_cast %113 : vector<1x16x1xf32> to vector<16x1xf32>
    %115 = vector.broadcast %114 : vector<16x1xf32> to vector<16x256xf32>
    %116 = arith.mulf %112, %115 : vector<16x256xf32>
    %c3_67 = arith.constant 3 : index
    %c0_68 = arith.constant 0 : index
    %c0_69 = arith.constant 0 : index
    %117 = vector.load %arg2[%c3_67, %c0_68, %c0_69] : memref<9x1x256xf32, #tpu.memory_space<vmem>>, vector<1x1x256xf32>
    %118 = vector.shape_cast %117 : vector<1x1x256xf32> to vector<1x256xf32>
    %119 = vector.broadcast %118 : vector<1x256xf32> to vector<16x256xf32>
    %120 = arith.mulf %116, %119 : vector<16x256xf32>
    %121 = arith.addf %109, %120 : vector<16x256xf32>
    %c4_70 = arith.constant 4 : index
    %c0_71 = arith.constant 0 : index
    %c0_72 = arith.constant 0 : index
    %122 = vector.load %arg6[%c4_70, %c0_71, %c0_72] : memref<9x16x1xf32, #tpu.memory_space<vmem>>, vector<1x16x1xf32>
    %123 = vector.shape_cast %122 : vector<1x16x1xf32> to vector<16x1xf32>
    %124 = vector.broadcast %123 : vector<16x1xf32> to vector<16x256xf32>
    %125 = arith.mulf %72, %124 : vector<16x256xf32>
    %c4_73 = arith.constant 4 : index
    %c0_74 = arith.constant 0 : index
    %c0_75 = arith.constant 0 : index
    %126 = vector.load %arg2[%c4_73, %c0_74, %c0_75] : memref<9x1x256xf32, #tpu.memory_space<vmem>>, vector<1x1x256xf32>
    %127 = vector.shape_cast %126 : vector<1x1x256xf32> to vector<1x256xf32>
    %128 = vector.broadcast %127 : vector<1x256xf32> to vector<16x256xf32>
    %129 = arith.mulf %125, %128 : vector<16x256xf32>
    %130 = arith.addf %121, %129 : vector<16x256xf32>
    %131 = vector.extract_strided_slice %72 {offsets = [0, 1], sizes = [16, 255], strides = [1, 1]} : vector<16x256xf32> to vector<16x255xf32>
    %132 = vector.extract_strided_slice %72 {offsets = [0, 0], sizes = [16, 1], strides = [1, 1]} : vector<16x256xf32> to vector<16x1xf32>
    %133 = tpu.concatenate %131, %132 in 1 : vector<16x255xf32>, vector<16x1xf32> -> vector<16x256xf32>
    %c5_76 = arith.constant 5 : index
    %c0_77 = arith.constant 0 : index
    %c0_78 = arith.constant 0 : index
    %134 = vector.load %arg6[%c5_76, %c0_77, %c0_78] : memref<9x16x1xf32, #tpu.memory_space<vmem>>, vector<1x16x1xf32>
    %135 = vector.shape_cast %134 : vector<1x16x1xf32> to vector<16x1xf32>
    %136 = vector.broadcast %135 : vector<16x1xf32> to vector<16x256xf32>
    %137 = arith.mulf %133, %136 : vector<16x256xf32>
    %c5_79 = arith.constant 5 : index
    %c0_80 = arith.constant 0 : index
    %c0_81 = arith.constant 0 : index
    %138 = vector.load %arg2[%c5_79, %c0_80, %c0_81] : memref<9x1x256xf32, #tpu.memory_space<vmem>>, vector<1x1x256xf32>
    %139 = vector.shape_cast %138 : vector<1x1x256xf32> to vector<1x256xf32>
    %140 = vector.broadcast %139 : vector<1x256xf32> to vector<16x256xf32>
    %141 = arith.mulf %137, %140 : vector<16x256xf32>
    %142 = arith.addf %130, %141 : vector<16x256xf32>
    %143 = vector.extract_strided_slice %72 {offsets = [0, 15], sizes = [16, 241], strides = [1, 1]} : vector<16x256xf32> to vector<16x241xf32>
    %144 = vector.extract_strided_slice %72 {offsets = [0, 0], sizes = [16, 15], strides = [1, 1]} : vector<16x256xf32> to vector<16x15xf32>
    %145 = tpu.concatenate %143, %144 in 1 : vector<16x241xf32>, vector<16x15xf32> -> vector<16x256xf32>
    %c6_82 = arith.constant 6 : index
    %c0_83 = arith.constant 0 : index
    %c0_84 = arith.constant 0 : index
    %146 = vector.load %arg6[%c6_82, %c0_83, %c0_84] : memref<9x16x1xf32, #tpu.memory_space<vmem>>, vector<1x16x1xf32>
    %147 = vector.shape_cast %146 : vector<1x16x1xf32> to vector<16x1xf32>
    %148 = vector.broadcast %147 : vector<16x1xf32> to vector<16x256xf32>
    %149 = arith.mulf %145, %148 : vector<16x256xf32>
    %c6_85 = arith.constant 6 : index
    %c0_86 = arith.constant 0 : index
    %c0_87 = arith.constant 0 : index
    %150 = vector.load %arg2[%c6_85, %c0_86, %c0_87] : memref<9x1x256xf32, #tpu.memory_space<vmem>>, vector<1x1x256xf32>
    %151 = vector.shape_cast %150 : vector<1x1x256xf32> to vector<1x256xf32>
    %152 = vector.broadcast %151 : vector<1x256xf32> to vector<16x256xf32>
    %153 = arith.mulf %149, %152 : vector<16x256xf32>
    %154 = arith.addf %142, %153 : vector<16x256xf32>
    %155 = vector.extract_strided_slice %72 {offsets = [0, 16], sizes = [16, 240], strides = [1, 1]} : vector<16x256xf32> to vector<16x240xf32>
    %156 = vector.extract_strided_slice %72 {offsets = [0, 0], sizes = [16, 16], strides = [1, 1]} : vector<16x256xf32> to vector<16x16xf32>
    %157 = tpu.concatenate %155, %156 in 1 : vector<16x240xf32>, vector<16x16xf32> -> vector<16x256xf32>
    %c7_88 = arith.constant 7 : index
    %c0_89 = arith.constant 0 : index
    %c0_90 = arith.constant 0 : index
    %158 = vector.load %arg6[%c7_88, %c0_89, %c0_90] : memref<9x16x1xf32, #tpu.memory_space<vmem>>, vector<1x16x1xf32>
    %159 = vector.shape_cast %158 : vector<1x16x1xf32> to vector<16x1xf32>
    %160 = vector.broadcast %159 : vector<16x1xf32> to vector<16x256xf32>
    %161 = arith.mulf %157, %160 : vector<16x256xf32>
    %c7_91 = arith.constant 7 : index
    %c0_92 = arith.constant 0 : index
    %c0_93 = arith.constant 0 : index
    %162 = vector.load %arg2[%c7_91, %c0_92, %c0_93] : memref<9x1x256xf32, #tpu.memory_space<vmem>>, vector<1x1x256xf32>
    %163 = vector.shape_cast %162 : vector<1x1x256xf32> to vector<1x256xf32>
    %164 = vector.broadcast %163 : vector<1x256xf32> to vector<16x256xf32>
    %165 = arith.mulf %161, %164 : vector<16x256xf32>
    %166 = arith.addf %154, %165 : vector<16x256xf32>
    %167 = vector.extract_strided_slice %72 {offsets = [0, 17], sizes = [16, 239], strides = [1, 1]} : vector<16x256xf32> to vector<16x239xf32>
    %168 = vector.extract_strided_slice %72 {offsets = [0, 0], sizes = [16, 17], strides = [1, 1]} : vector<16x256xf32> to vector<16x17xf32>
    %169 = tpu.concatenate %167, %168 in 1 : vector<16x239xf32>, vector<16x17xf32> -> vector<16x256xf32>
    %c8 = arith.constant 8 : index
    %c0_94 = arith.constant 0 : index
    %c0_95 = arith.constant 0 : index
    %170 = vector.load %arg6[%c8, %c0_94, %c0_95] : memref<9x16x1xf32, #tpu.memory_space<vmem>>, vector<1x16x1xf32>
    %171 = vector.shape_cast %170 : vector<1x16x1xf32> to vector<16x1xf32>
    %172 = vector.broadcast %171 : vector<16x1xf32> to vector<16x256xf32>
    %173 = arith.mulf %169, %172 : vector<16x256xf32>
    %c8_96 = arith.constant 8 : index
    %c0_97 = arith.constant 0 : index
    %c0_98 = arith.constant 0 : index
    %174 = vector.load %arg2[%c8_96, %c0_97, %c0_98] : memref<9x1x256xf32, #tpu.memory_space<vmem>>, vector<1x1x256xf32>
    %175 = vector.shape_cast %174 : vector<1x1x256xf32> to vector<1x256xf32>
    %176 = vector.broadcast %175 : vector<1x256xf32> to vector<16x256xf32>
    %177 = arith.mulf %173, %176 : vector<16x256xf32>
    %178 = arith.addf %166, %177 : vector<16x256xf32>
    %c0_99 = arith.constant 0 : index
    %c0_100 = arith.constant 0 : index
    %179 = vector.load %arg7[%c0_99, %c0_100] : memref<16x1xf32, #tpu.memory_space<vmem>>, vector<16x1xf32>
    %180 = vector.broadcast %179 : vector<16x1xf32> to vector<16x256xf32>
    %181 = arith.mulf %178, %180 : vector<16x256xf32>
    %c0_101 = arith.constant 0 : index
    %c0_102 = arith.constant 0 : index
    %182 = vector.load %arg8[%c0_101, %c0_102] : memref<16x1xf32, #tpu.memory_space<vmem>>, vector<16x1xf32>
    %183 = vector.broadcast %182 : vector<16x1xf32> to vector<16x256xf32>
    %184 = arith.addf %181, %183 : vector<16x256xf32>
    %cst_103 = arith.constant 0.000000e+00 : f32
    %185 = vector.broadcast %cst_103 : f32 to vector<16x256xf32>
    %186 = arith.maximumf %184, %185 : vector<16x256xf32>
    %cst_104 = arith.constant dense<0.000000e+00> : vector<16xf32>
    %187 = vector.multi_reduction <add>, %186, %cst_104 [1] : vector<16x256xf32> to vector<16xf32>
    %188 = vector.shape_cast %187 : vector<16xf32> to vector<16x1xf32>
    %cst_105 = arith.constant 2.560000e+02 : f32
    %189 = vector.broadcast %cst_105 : f32 to vector<16x1xf32>
    %190 = arith.divf %188, %189 : vector<16x1xf32>
    %c0_106 = arith.constant 0 : index
    %c0_107 = arith.constant 0 : index
    %191 = vector.load %arg12[%c0_106, %c0_107] : memref<16x1xf32, #tpu.memory_space<vmem>>, vector<16x1xf32>
    %c0_108 = arith.constant 0 : index
    %c0_109 = arith.constant 0 : index
    %c0_110 = arith.constant 0 : index
    %192 = vector.load %arg9[%c0_108, %c0_109, %c0_110] : memref<4x16x1xf32, #tpu.memory_space<vmem>>, vector<1x16x1xf32>
    %193 = vector.shape_cast %192 : vector<1x16x1xf32> to vector<16x1xf32>
    %194 = arith.mulf %193, %190 : vector<16x1xf32>
    %cst_111 = arith.constant dense<0.000000e+00> : vector<1xf32>
    %195 = vector.multi_reduction <add>, %194, %cst_111 [0] : vector<16x1xf32> to vector<1xf32>
    %196 = vector.shape_cast %195 : vector<1xf32> to vector<1x1xf32>
    %c0_112 = arith.constant 0 : index
    %c0_113 = arith.constant 0 : index
    %c0_114 = arith.constant 0 : index
    %197 = vector.load %arg10[%c0_112, %c0_113, %c0_114] : memref<4x1x1xf32, #tpu.memory_space<vmem>>, vector<1x1x1xf32>
    %198 = vector.shape_cast %197 : vector<1x1x1xf32> to vector<1x1xf32>
    %199 = arith.addf %196, %198 : vector<1x1xf32>
    %cst_115 = arith.constant 0.000000e+00 : f32
    %200 = vector.broadcast %cst_115 : f32 to vector<1x1xf32>
    %201 = arith.maximumf %199, %200 : vector<1x1xf32>
    %c0_116 = arith.constant 0 : index
    %c0_117 = arith.constant 0 : index
    %c0_118 = arith.constant 0 : index
    %202 = vector.load %arg11[%c0_116, %c0_117, %c0_118] : memref<4x16x1xf32, #tpu.memory_space<vmem>>, vector<1x16x1xf32>
    %203 = vector.shape_cast %202 : vector<1x16x1xf32> to vector<16x1xf32>
    %204 = vector.broadcast %201 : vector<1x1xf32> to vector<16x1xf32>
    %205 = arith.mulf %203, %204 : vector<16x1xf32>
    %206 = arith.addf %191, %205 : vector<16x1xf32>
    %c1_119 = arith.constant 1 : index
    %c0_120 = arith.constant 0 : index
    %c0_121 = arith.constant 0 : index
    %207 = vector.load %arg9[%c1_119, %c0_120, %c0_121] : memref<4x16x1xf32, #tpu.memory_space<vmem>>, vector<1x16x1xf32>
    %208 = vector.shape_cast %207 : vector<1x16x1xf32> to vector<16x1xf32>
    %209 = arith.mulf %208, %190 : vector<16x1xf32>
    %cst_122 = arith.constant dense<0.000000e+00> : vector<1xf32>
    %210 = vector.multi_reduction <add>, %209, %cst_122 [0] : vector<16x1xf32> to vector<1xf32>
    %211 = vector.shape_cast %210 : vector<1xf32> to vector<1x1xf32>
    %c1_123 = arith.constant 1 : index
    %c0_124 = arith.constant 0 : index
    %c0_125 = arith.constant 0 : index
    %212 = vector.load %arg10[%c1_123, %c0_124, %c0_125] : memref<4x1x1xf32, #tpu.memory_space<vmem>>, vector<1x1x1xf32>
    %213 = vector.shape_cast %212 : vector<1x1x1xf32> to vector<1x1xf32>
    %214 = arith.addf %211, %213 : vector<1x1xf32>
    %cst_126 = arith.constant 0.000000e+00 : f32
    %215 = vector.broadcast %cst_126 : f32 to vector<1x1xf32>
    %216 = arith.maximumf %214, %215 : vector<1x1xf32>
    %c1_127 = arith.constant 1 : index
    %c0_128 = arith.constant 0 : index
    %c0_129 = arith.constant 0 : index
    %217 = vector.load %arg11[%c1_127, %c0_128, %c0_129] : memref<4x16x1xf32, #tpu.memory_space<vmem>>, vector<1x16x1xf32>
    %218 = vector.shape_cast %217 : vector<1x16x1xf32> to vector<16x1xf32>
    %219 = vector.broadcast %216 : vector<1x1xf32> to vector<16x1xf32>
    %220 = arith.mulf %218, %219 : vector<16x1xf32>
    %221 = arith.addf %206, %220 : vector<16x1xf32>
    %c2_130 = arith.constant 2 : index
    %c0_131 = arith.constant 0 : index
    %c0_132 = arith.constant 0 : index
    %222 = vector.load %arg9[%c2_130, %c0_131, %c0_132] : memref<4x16x1xf32, #tpu.memory_space<vmem>>, vector<1x16x1xf32>
    %223 = vector.shape_cast %222 : vector<1x16x1xf32> to vector<16x1xf32>
    %224 = arith.mulf %223, %190 : vector<16x1xf32>
    %cst_133 = arith.constant dense<0.000000e+00> : vector<1xf32>
    %225 = vector.multi_reduction <add>, %224, %cst_133 [0] : vector<16x1xf32> to vector<1xf32>
    %226 = vector.shape_cast %225 : vector<1xf32> to vector<1x1xf32>
    %c2_134 = arith.constant 2 : index
    %c0_135 = arith.constant 0 : index
    %c0_136 = arith.constant 0 : index
    %227 = vector.load %arg10[%c2_134, %c0_135, %c0_136] : memref<4x1x1xf32, #tpu.memory_space<vmem>>, vector<1x1x1xf32>
    %228 = vector.shape_cast %227 : vector<1x1x1xf32> to vector<1x1xf32>
    %229 = arith.addf %226, %228 : vector<1x1xf32>
    %cst_137 = arith.constant 0.000000e+00 : f32
    %230 = vector.broadcast %cst_137 : f32 to vector<1x1xf32>
    %231 = arith.maximumf %229, %230 : vector<1x1xf32>
    %c2_138 = arith.constant 2 : index
    %c0_139 = arith.constant 0 : index
    %c0_140 = arith.constant 0 : index
    %232 = vector.load %arg11[%c2_138, %c0_139, %c0_140] : memref<4x16x1xf32, #tpu.memory_space<vmem>>, vector<1x16x1xf32>
    %233 = vector.shape_cast %232 : vector<1x16x1xf32> to vector<16x1xf32>
    %234 = vector.broadcast %231 : vector<1x1xf32> to vector<16x1xf32>
    %235 = arith.mulf %233, %234 : vector<16x1xf32>
    %236 = arith.addf %221, %235 : vector<16x1xf32>
    %c3_141 = arith.constant 3 : index
    %c0_142 = arith.constant 0 : index
    %c0_143 = arith.constant 0 : index
    %237 = vector.load %arg9[%c3_141, %c0_142, %c0_143] : memref<4x16x1xf32, #tpu.memory_space<vmem>>, vector<1x16x1xf32>
    %238 = vector.shape_cast %237 : vector<1x16x1xf32> to vector<16x1xf32>
    %239 = arith.mulf %238, %190 : vector<16x1xf32>
    %cst_144 = arith.constant dense<0.000000e+00> : vector<1xf32>
    %240 = vector.multi_reduction <add>, %239, %cst_144 [0] : vector<16x1xf32> to vector<1xf32>
    %241 = vector.shape_cast %240 : vector<1xf32> to vector<1x1xf32>
    %c3_145 = arith.constant 3 : index
    %c0_146 = arith.constant 0 : index
    %c0_147 = arith.constant 0 : index
    %242 = vector.load %arg10[%c3_145, %c0_146, %c0_147] : memref<4x1x1xf32, #tpu.memory_space<vmem>>, vector<1x1x1xf32>
    %243 = vector.shape_cast %242 : vector<1x1x1xf32> to vector<1x1xf32>
    %244 = arith.addf %241, %243 : vector<1x1xf32>
    %cst_148 = arith.constant 0.000000e+00 : f32
    %245 = vector.broadcast %cst_148 : f32 to vector<1x1xf32>
    %246 = arith.maximumf %244, %245 : vector<1x1xf32>
    %c3_149 = arith.constant 3 : index
    %c0_150 = arith.constant 0 : index
    %c0_151 = arith.constant 0 : index
    %247 = vector.load %arg11[%c3_149, %c0_150, %c0_151] : memref<4x16x1xf32, #tpu.memory_space<vmem>>, vector<1x16x1xf32>
    %248 = vector.shape_cast %247 : vector<1x16x1xf32> to vector<16x1xf32>
    %249 = vector.broadcast %246 : vector<1x1xf32> to vector<16x1xf32>
    %250 = arith.mulf %248, %249 : vector<16x1xf32>
    %251 = arith.addf %236, %250 : vector<16x1xf32>
    %cst_152 = arith.constant 3.000000e+00 : f32
    %252 = vector.broadcast %cst_152 : f32 to vector<16x1xf32>
    %253 = arith.addf %251, %252 : vector<16x1xf32>
    %cst_153 = arith.constant 0.000000e+00 : f32
    %cst_154 = arith.constant 6.000000e+00 : f32
    %254 = vector.broadcast %cst_153 : f32 to vector<16x1xf32>
    %255 = arith.maximumf %254, %253 : vector<16x1xf32>
    %256 = vector.broadcast %cst_154 : f32 to vector<16x1xf32>
    %257 = arith.minimumf %256, %255 : vector<16x1xf32>
    %cst_155 = arith.constant 0.166666672 : f32
    %258 = vector.broadcast %cst_155 : f32 to vector<16x1xf32>
    %259 = arith.mulf %257, %258 : vector<16x1xf32>
    %260 = vector.broadcast %259 : vector<16x1xf32> to vector<16x256xf32>
    %261 = arith.mulf %186, %260 : vector<16x256xf32>
    %c0_156 = arith.constant 0 : index
    %c0_157 = arith.constant 0 : index
    %262 = vector.load %arg20[%c0_156, %c0_157] : memref<16x256xf32, #tpu.memory_space<vmem>>, vector<16x256xf32>
    tpu.vector_store %arg20[%c0_156, %c0_157], %261 {strides = array<i32>} : memref<16x256xf32, #tpu.memory_space<vmem>>, vector<16x256xf32>,
    %cst_158 = arith.constant 0.000000e+00 : f32
    %263 = vector.broadcast %cst_158 : f32 to vector<8x256xf32>
    %c0_159 = arith.constant 0 : index
    %c0_160 = arith.constant 0 : index
    %c0_161 = arith.constant 0 : index
    %264 = vector.load %arg13[%c0_159, %c0_160, %c0_161] : memref<16x8x1xf32, #tpu.memory_space<vmem>>, vector<1x8x1xf32>
    %265 = vector.shape_cast %264 : vector<1x8x1xf32> to vector<8x1xf32>
    %c0_162 = arith.constant 0 : index
    %c0_163 = arith.constant 0 : index
    %266 = vector.load %arg20[%c0_162, %c0_163] : memref<16x256xf32, #tpu.memory_space<vmem>>, vector<1x256xf32>
    %267 = vector.broadcast %265 : vector<8x1xf32> to vector<8x256xf32>
    %268 = vector.broadcast %266 : vector<1x256xf32> to vector<8x256xf32>
    %269 = arith.mulf %267, %268 : vector<8x256xf32>
    %270 = arith.addf %263, %269 : vector<8x256xf32>
    %c1_164 = arith.constant 1 : index
    %c0_165 = arith.constant 0 : index
    %c0_166 = arith.constant 0 : index
    %271 = vector.load %arg13[%c1_164, %c0_165, %c0_166] : memref<16x8x1xf32, #tpu.memory_space<vmem>>, vector<1x8x1xf32>
    %272 = vector.shape_cast %271 : vector<1x8x1xf32> to vector<8x1xf32>
    %c1_167 = arith.constant 1 : index
    %c0_168 = arith.constant 0 : index
    %273 = vector.load %arg20[%c1_167, %c0_168] : memref<16x256xf32, #tpu.memory_space<vmem>>, vector<1x256xf32>
    %274 = vector.broadcast %272 : vector<8x1xf32> to vector<8x256xf32>
    %275 = vector.broadcast %273 : vector<1x256xf32> to vector<8x256xf32>
    %276 = arith.mulf %274, %275 : vector<8x256xf32>
    %277 = arith.addf %270, %276 : vector<8x256xf32>
    %c2_169 = arith.constant 2 : index
    %c0_170 = arith.constant 0 : index
    %c0_171 = arith.constant 0 : index
    %278 = vector.load %arg13[%c2_169, %c0_170, %c0_171] : memref<16x8x1xf32, #tpu.memory_space<vmem>>, vector<1x8x1xf32>
    %279 = vector.shape_cast %278 : vector<1x8x1xf32> to vector<8x1xf32>
    %c2_172 = arith.constant 2 : index
    %c0_173 = arith.constant 0 : index
    %280 = vector.load %arg20[%c2_172, %c0_173] : memref<16x256xf32, #tpu.memory_space<vmem>>, vector<1x256xf32>
    %281 = vector.broadcast %279 : vector<8x1xf32> to vector<8x256xf32>
    %282 = vector.broadcast %280 : vector<1x256xf32> to vector<8x256xf32>
    %283 = arith.mulf %281, %282 : vector<8x256xf32>
    %284 = arith.addf %277, %283 : vector<8x256xf32>
    %c3_174 = arith.constant 3 : index
    %c0_175 = arith.constant 0 : index
    %c0_176 = arith.constant 0 : index
    %285 = vector.load %arg13[%c3_174, %c0_175, %c0_176] : memref<16x8x1xf32, #tpu.memory_space<vmem>>, vector<1x8x1xf32>
    %286 = vector.shape_cast %285 : vector<1x8x1xf32> to vector<8x1xf32>
    %c3_177 = arith.constant 3 : index
    %c0_178 = arith.constant 0 : index
    %287 = vector.load %arg20[%c3_177, %c0_178] : memref<16x256xf32, #tpu.memory_space<vmem>>, vector<1x256xf32>
    %288 = vector.broadcast %286 : vector<8x1xf32> to vector<8x256xf32>
    %289 = vector.broadcast %287 : vector<1x256xf32> to vector<8x256xf32>
    %290 = arith.mulf %288, %289 : vector<8x256xf32>
    %291 = arith.addf %284, %290 : vector<8x256xf32>
    %c4_179 = arith.constant 4 : index
    %c0_180 = arith.constant 0 : index
    %c0_181 = arith.constant 0 : index
    %292 = vector.load %arg13[%c4_179, %c0_180, %c0_181] : memref<16x8x1xf32, #tpu.memory_space<vmem>>, vector<1x8x1xf32>
    %293 = vector.shape_cast %292 : vector<1x8x1xf32> to vector<8x1xf32>
    %c4_182 = arith.constant 4 : index
    %c0_183 = arith.constant 0 : index
    %294 = vector.load %arg20[%c4_182, %c0_183] : memref<16x256xf32, #tpu.memory_space<vmem>>, vector<1x256xf32>
    %295 = vector.broadcast %293 : vector<8x1xf32> to vector<8x256xf32>
    %296 = vector.broadcast %294 : vector<1x256xf32> to vector<8x256xf32>
    %297 = arith.mulf %295, %296 : vector<8x256xf32>
    %298 = arith.addf %291, %297 : vector<8x256xf32>
    %c5_184 = arith.constant 5 : index
    %c0_185 = arith.constant 0 : index
    %c0_186 = arith.constant 0 : index
    %299 = vector.load %arg13[%c5_184, %c0_185, %c0_186] : memref<16x8x1xf32, #tpu.memory_space<vmem>>, vector<1x8x1xf32>
    %300 = vector.shape_cast %299 : vector<1x8x1xf32> to vector<8x1xf32>
    %c5_187 = arith.constant 5 : index
    %c0_188 = arith.constant 0 : index
    %301 = vector.load %arg20[%c5_187, %c0_188] : memref<16x256xf32, #tpu.memory_space<vmem>>, vector<1x256xf32>
    %302 = vector.broadcast %300 : vector<8x1xf32> to vector<8x256xf32>
    %303 = vector.broadcast %301 : vector<1x256xf32> to vector<8x256xf32>
    %304 = arith.mulf %302, %303 : vector<8x256xf32>
    %305 = arith.addf %298, %304 : vector<8x256xf32>
    %c6_189 = arith.constant 6 : index
    %c0_190 = arith.constant 0 : index
    %c0_191 = arith.constant 0 : index
    %306 = vector.load %arg13[%c6_189, %c0_190, %c0_191] : memref<16x8x1xf32, #tpu.memory_space<vmem>>, vector<1x8x1xf32>
    %307 = vector.shape_cast %306 : vector<1x8x1xf32> to vector<8x1xf32>
    %c6_192 = arith.constant 6 : index
    %c0_193 = arith.constant 0 : index
    %308 = vector.load %arg20[%c6_192, %c0_193] : memref<16x256xf32, #tpu.memory_space<vmem>>, vector<1x256xf32>
    %309 = vector.broadcast %307 : vector<8x1xf32> to vector<8x256xf32>
    %310 = vector.broadcast %308 : vector<1x256xf32> to vector<8x256xf32>
    %311 = arith.mulf %309, %310 : vector<8x256xf32>
    %312 = arith.addf %305, %311 : vector<8x256xf32>
    %c7_194 = arith.constant 7 : index
    %c0_195 = arith.constant 0 : index
    %c0_196 = arith.constant 0 : index
    %313 = vector.load %arg13[%c7_194, %c0_195, %c0_196] : memref<16x8x1xf32, #tpu.memory_space<vmem>>, vector<1x8x1xf32>
    %314 = vector.shape_cast %313 : vector<1x8x1xf32> to vector<8x1xf32>
    %c7_197 = arith.constant 7 : index
    %c0_198 = arith.constant 0 : index
    %315 = vector.load %arg20[%c7_197, %c0_198] : memref<16x256xf32, #tpu.memory_space<vmem>>, vector<1x256xf32>
    %316 = vector.broadcast %314 : vector<8x1xf32> to vector<8x256xf32>
    %317 = vector.broadcast %315 : vector<1x256xf32> to vector<8x256xf32>
    %318 = arith.mulf %316, %317 : vector<8x256xf32>
    %319 = arith.addf %312, %318 : vector<8x256xf32>
    %c8_199 = arith.constant 8 : index
    %c0_200 = arith.constant 0 : index
    %c0_201 = arith.constant 0 : index
    %320 = vector.load %arg13[%c8_199, %c0_200, %c0_201] : memref<16x8x1xf32, #tpu.memory_space<vmem>>, vector<1x8x1xf32>
    %321 = vector.shape_cast %320 : vector<1x8x1xf32> to vector<8x1xf32>
    %c8_202 = arith.constant 8 : index
    %c0_203 = arith.constant 0 : index
    %322 = vector.load %arg20[%c8_202, %c0_203] : memref<16x256xf32, #tpu.memory_space<vmem>>, vector<1x256xf32>
    %323 = vector.broadcast %321 : vector<8x1xf32> to vector<8x256xf32>
    %324 = vector.broadcast %322 : vector<1x256xf32> to vector<8x256xf32>
    %325 = arith.mulf %323, %324 : vector<8x256xf32>
    %326 = arith.addf %319, %325 : vector<8x256xf32>
    %c9 = arith.constant 9 : index
    %c0_204 = arith.constant 0 : index
    %c0_205 = arith.constant 0 : index
    %327 = vector.load %arg13[%c9, %c0_204, %c0_205] : memref<16x8x1xf32, #tpu.memory_space<vmem>>, vector<1x8x1xf32>
    %328 = vector.shape_cast %327 : vector<1x8x1xf32> to vector<8x1xf32>
    %c9_206 = arith.constant 9 : index
    %c0_207 = arith.constant 0 : index
    %329 = vector.load %arg20[%c9_206, %c0_207] : memref<16x256xf32, #tpu.memory_space<vmem>>, vector<1x256xf32>
    %330 = vector.broadcast %328 : vector<8x1xf32> to vector<8x256xf32>
    %331 = vector.broadcast %329 : vector<1x256xf32> to vector<8x256xf32>
    %332 = arith.mulf %330, %331 : vector<8x256xf32>
    %333 = arith.addf %326, %332 : vector<8x256xf32>
    %c10 = arith.constant 10 : index
    %c0_208 = arith.constant 0 : index
    %c0_209 = arith.constant 0 : index
    %334 = vector.load %arg13[%c10, %c0_208, %c0_209] : memref<16x8x1xf32, #tpu.memory_space<vmem>>, vector<1x8x1xf32>
    %335 = vector.shape_cast %334 : vector<1x8x1xf32> to vector<8x1xf32>
    %c10_210 = arith.constant 10 : index
    %c0_211 = arith.constant 0 : index
    %336 = vector.load %arg20[%c10_210, %c0_211] : memref<16x256xf32, #tpu.memory_space<vmem>>, vector<1x256xf32>
    %337 = vector.broadcast %335 : vector<8x1xf32> to vector<8x256xf32>
    %338 = vector.broadcast %336 : vector<1x256xf32> to vector<8x256xf32>
    %339 = arith.mulf %337, %338 : vector<8x256xf32>
    %340 = arith.addf %333, %339 : vector<8x256xf32>
    %c11 = arith.constant 11 : index
    %c0_212 = arith.constant 0 : index
    %c0_213 = arith.constant 0 : index
    %341 = vector.load %arg13[%c11, %c0_212, %c0_213] : memref<16x8x1xf32, #tpu.memory_space<vmem>>, vector<1x8x1xf32>
    %342 = vector.shape_cast %341 : vector<1x8x1xf32> to vector<8x1xf32>
    %c11_214 = arith.constant 11 : index
    %c0_215 = arith.constant 0 : index
    %343 = vector.load %arg20[%c11_214, %c0_215] : memref<16x256xf32, #tpu.memory_space<vmem>>, vector<1x256xf32>
    %344 = vector.broadcast %342 : vector<8x1xf32> to vector<8x256xf32>
    %345 = vector.broadcast %343 : vector<1x256xf32> to vector<8x256xf32>
    %346 = arith.mulf %344, %345 : vector<8x256xf32>
    %347 = arith.addf %340, %346 : vector<8x256xf32>
    %c12 = arith.constant 12 : index
    %c0_216 = arith.constant 0 : index
    %c0_217 = arith.constant 0 : index
    %348 = vector.load %arg13[%c12, %c0_216, %c0_217] : memref<16x8x1xf32, #tpu.memory_space<vmem>>, vector<1x8x1xf32>
    %349 = vector.shape_cast %348 : vector<1x8x1xf32> to vector<8x1xf32>
    %c12_218 = arith.constant 12 : index
    %c0_219 = arith.constant 0 : index
    %350 = vector.load %arg20[%c12_218, %c0_219] : memref<16x256xf32, #tpu.memory_space<vmem>>, vector<1x256xf32>
    %351 = vector.broadcast %349 : vector<8x1xf32> to vector<8x256xf32>
    %352 = vector.broadcast %350 : vector<1x256xf32> to vector<8x256xf32>
    %353 = arith.mulf %351, %352 : vector<8x256xf32>
    %354 = arith.addf %347, %353 : vector<8x256xf32>
    %c13 = arith.constant 13 : index
    %c0_220 = arith.constant 0 : index
    %c0_221 = arith.constant 0 : index
    %355 = vector.load %arg13[%c13, %c0_220, %c0_221] : memref<16x8x1xf32, #tpu.memory_space<vmem>>, vector<1x8x1xf32>
    %356 = vector.shape_cast %355 : vector<1x8x1xf32> to vector<8x1xf32>
    %c13_222 = arith.constant 13 : index
    %c0_223 = arith.constant 0 : index
    %357 = vector.load %arg20[%c13_222, %c0_223] : memref<16x256xf32, #tpu.memory_space<vmem>>, vector<1x256xf32>
    %358 = vector.broadcast %356 : vector<8x1xf32> to vector<8x256xf32>
    %359 = vector.broadcast %357 : vector<1x256xf32> to vector<8x256xf32>
    %360 = arith.mulf %358, %359 : vector<8x256xf32>
    %361 = arith.addf %354, %360 : vector<8x256xf32>
    %c14 = arith.constant 14 : index
    %c0_224 = arith.constant 0 : index
    %c0_225 = arith.constant 0 : index
    %362 = vector.load %arg13[%c14, %c0_224, %c0_225] : memref<16x8x1xf32, #tpu.memory_space<vmem>>, vector<1x8x1xf32>
    %363 = vector.shape_cast %362 : vector<1x8x1xf32> to vector<8x1xf32>
    %c14_226 = arith.constant 14 : index
    %c0_227 = arith.constant 0 : index
    %364 = vector.load %arg20[%c14_226, %c0_227] : memref<16x256xf32, #tpu.memory_space<vmem>>, vector<1x256xf32>
    %365 = vector.broadcast %363 : vector<8x1xf32> to vector<8x256xf32>
    %366 = vector.broadcast %364 : vector<1x256xf32> to vector<8x256xf32>
    %367 = arith.mulf %365, %366 : vector<8x256xf32>
    %368 = arith.addf %361, %367 : vector<8x256xf32>
    %c15 = arith.constant 15 : index
    %c0_228 = arith.constant 0 : index
    %c0_229 = arith.constant 0 : index
    %369 = vector.load %arg13[%c15, %c0_228, %c0_229] : memref<16x8x1xf32, #tpu.memory_space<vmem>>, vector<1x8x1xf32>
    %370 = vector.shape_cast %369 : vector<1x8x1xf32> to vector<8x1xf32>
    %c15_230 = arith.constant 15 : index
    %c0_231 = arith.constant 0 : index
    %371 = vector.load %arg20[%c15_230, %c0_231] : memref<16x256xf32, #tpu.memory_space<vmem>>, vector<1x256xf32>
    %372 = vector.broadcast %370 : vector<8x1xf32> to vector<8x256xf32>
    %373 = vector.broadcast %371 : vector<1x256xf32> to vector<8x256xf32>
    %374 = arith.mulf %372, %373 : vector<8x256xf32>
    %375 = arith.addf %368, %374 : vector<8x256xf32>
    %c0_232 = arith.constant 0 : index
    %c0_233 = arith.constant 0 : index
    %376 = vector.load %arg14[%c0_232, %c0_233] : memref<8x1xf32, #tpu.memory_space<vmem>>, vector<8x1xf32>
    %377 = vector.broadcast %376 : vector<8x1xf32> to vector<8x256xf32>
    %378 = arith.mulf %375, %377 : vector<8x256xf32>
    %c0_234 = arith.constant 0 : index
    %c0_235 = arith.constant 0 : index
    %379 = vector.load %arg15[%c0_234, %c0_235] : memref<8x1xf32, #tpu.memory_space<vmem>>, vector<8x1xf32>
    %380 = vector.broadcast %379 : vector<8x1xf32> to vector<8x256xf32>
    %381 = arith.addf %378, %380 : vector<8x256xf32>
    %cst_236 = arith.constant 0.000000e+00 : f32
    %382 = vector.broadcast %cst_236 : f32 to vector<8x256xf32>
    %383 = vector.extract_strided_slice %381 {offsets = [0, 239], sizes = [8, 17], strides = [1, 1]} : vector<8x256xf32> to vector<8x17xf32>
    %384 = vector.extract_strided_slice %381 {offsets = [0, 0], sizes = [8, 239], strides = [1, 1]} : vector<8x256xf32> to vector<8x239xf32>
    %385 = tpu.concatenate %383, %384 in 1 : vector<8x17xf32>, vector<8x239xf32> -> vector<8x256xf32>
    %c0_237 = arith.constant 0 : index
    %c0_238 = arith.constant 0 : index
    %c0_239 = arith.constant 0 : index
    %386 = vector.load %arg16[%c0_237, %c0_238, %c0_239] : memref<9x8x1xf32, #tpu.memory_space<vmem>>, vector<1x8x1xf32>
    %387 = vector.shape_cast %386 : vector<1x8x1xf32> to vector<8x1xf32>
    %388 = vector.broadcast %387 : vector<8x1xf32> to vector<8x256xf32>
    %389 = arith.mulf %385, %388 : vector<8x256xf32>
    %c0_240 = arith.constant 0 : index
    %c0_241 = arith.constant 0 : index
    %c0_242 = arith.constant 0 : index
    %390 = vector.load %arg2[%c0_240, %c0_241, %c0_242] : memref<9x1x256xf32, #tpu.memory_space<vmem>>, vector<1x1x256xf32>
    %391 = vector.shape_cast %390 : vector<1x1x256xf32> to vector<1x256xf32>
    %392 = vector.broadcast %391 : vector<1x256xf32> to vector<8x256xf32>
    %393 = arith.mulf %389, %392 : vector<8x256xf32>
    %394 = arith.addf %382, %393 : vector<8x256xf32>
    %395 = vector.extract_strided_slice %381 {offsets = [0, 240], sizes = [8, 16], strides = [1, 1]} : vector<8x256xf32> to vector<8x16xf32>
    %396 = vector.extract_strided_slice %381 {offsets = [0, 0], sizes = [8, 240], strides = [1, 1]} : vector<8x256xf32> to vector<8x240xf32>
    %397 = tpu.concatenate %395, %396 in 1 : vector<8x16xf32>, vector<8x240xf32> -> vector<8x256xf32>
    %c1_243 = arith.constant 1 : index
    %c0_244 = arith.constant 0 : index
    %c0_245 = arith.constant 0 : index
    %398 = vector.load %arg16[%c1_243, %c0_244, %c0_245] : memref<9x8x1xf32, #tpu.memory_space<vmem>>, vector<1x8x1xf32>
    %399 = vector.shape_cast %398 : vector<1x8x1xf32> to vector<8x1xf32>
    %400 = vector.broadcast %399 : vector<8x1xf32> to vector<8x256xf32>
    %401 = arith.mulf %397, %400 : vector<8x256xf32>
    %c1_246 = arith.constant 1 : index
    %c0_247 = arith.constant 0 : index
    %c0_248 = arith.constant 0 : index
    %402 = vector.load %arg2[%c1_246, %c0_247, %c0_248] : memref<9x1x256xf32, #tpu.memory_space<vmem>>, vector<1x1x256xf32>
    %403 = vector.shape_cast %402 : vector<1x1x256xf32> to vector<1x256xf32>
    %404 = vector.broadcast %403 : vector<1x256xf32> to vector<8x256xf32>
    %405 = arith.mulf %401, %404 : vector<8x256xf32>
    %406 = arith.addf %394, %405 : vector<8x256xf32>
    %407 = vector.extract_strided_slice %381 {offsets = [0, 241], sizes = [8, 15], strides = [1, 1]} : vector<8x256xf32> to vector<8x15xf32>
    %408 = vector.extract_strided_slice %381 {offsets = [0, 0], sizes = [8, 241], strides = [1, 1]} : vector<8x256xf32> to vector<8x241xf32>
    %409 = tpu.concatenate %407, %408 in 1 : vector<8x15xf32>, vector<8x241xf32> -> vector<8x256xf32>
    %c2_249 = arith.constant 2 : index
    %c0_250 = arith.constant 0 : index
    %c0_251 = arith.constant 0 : index
    %410 = vector.load %arg16[%c2_249, %c0_250, %c0_251] : memref<9x8x1xf32, #tpu.memory_space<vmem>>, vector<1x8x1xf32>
    %411 = vector.shape_cast %410 : vector<1x8x1xf32> to vector<8x1xf32>
    %412 = vector.broadcast %411 : vector<8x1xf32> to vector<8x256xf32>
    %413 = arith.mulf %409, %412 : vector<8x256xf32>
    %c2_252 = arith.constant 2 : index
    %c0_253 = arith.constant 0 : index
    %c0_254 = arith.constant 0 : index
    %414 = vector.load %arg2[%c2_252, %c0_253, %c0_254] : memref<9x1x256xf32, #tpu.memory_space<vmem>>, vector<1x1x256xf32>
    %415 = vector.shape_cast %414 : vector<1x1x256xf32> to vector<1x256xf32>
    %416 = vector.broadcast %415 : vector<1x256xf32> to vector<8x256xf32>
    %417 = arith.mulf %413, %416 : vector<8x256xf32>
    %418 = arith.addf %406, %417 : vector<8x256xf32>
    %419 = vector.extract_strided_slice %381 {offsets = [0, 255], sizes = [8, 1], strides = [1, 1]} : vector<8x256xf32> to vector<8x1xf32>
    %420 = vector.extract_strided_slice %381 {offsets = [0, 0], sizes = [8, 255], strides = [1, 1]} : vector<8x256xf32> to vector<8x255xf32>
    %421 = tpu.concatenate %419, %420 in 1 : vector<8x1xf32>, vector<8x255xf32> -> vector<8x256xf32>
    %c3_255 = arith.constant 3 : index
    %c0_256 = arith.constant 0 : index
    %c0_257 = arith.constant 0 : index
    %422 = vector.load %arg16[%c3_255, %c0_256, %c0_257] : memref<9x8x1xf32, #tpu.memory_space<vmem>>, vector<1x8x1xf32>
    %423 = vector.shape_cast %422 : vector<1x8x1xf32> to vector<8x1xf32>
    %424 = vector.broadcast %423 : vector<8x1xf32> to vector<8x256xf32>
    %425 = arith.mulf %421, %424 : vector<8x256xf32>
    %c3_258 = arith.constant 3 : index
    %c0_259 = arith.constant 0 : index
    %c0_260 = arith.constant 0 : index
    %426 = vector.load %arg2[%c3_258, %c0_259, %c0_260] : memref<9x1x256xf32, #tpu.memory_space<vmem>>, vector<1x1x256xf32>
    %427 = vector.shape_cast %426 : vector<1x1x256xf32> to vector<1x256xf32>
    %428 = vector.broadcast %427 : vector<1x256xf32> to vector<8x256xf32>
    %429 = arith.mulf %425, %428 : vector<8x256xf32>
    %430 = arith.addf %418, %429 : vector<8x256xf32>
    %c4_261 = arith.constant 4 : index
    %c0_262 = arith.constant 0 : index
    %c0_263 = arith.constant 0 : index
    %431 = vector.load %arg16[%c4_261, %c0_262, %c0_263] : memref<9x8x1xf32, #tpu.memory_space<vmem>>, vector<1x8x1xf32>
    %432 = vector.shape_cast %431 : vector<1x8x1xf32> to vector<8x1xf32>
    %433 = vector.broadcast %432 : vector<8x1xf32> to vector<8x256xf32>
    %434 = arith.mulf %381, %433 : vector<8x256xf32>
    %c4_264 = arith.constant 4 : index
    %c0_265 = arith.constant 0 : index
    %c0_266 = arith.constant 0 : index
    %435 = vector.load %arg2[%c4_264, %c0_265, %c0_266] : memref<9x1x256xf32, #tpu.memory_space<vmem>>, vector<1x1x256xf32>
    %436 = vector.shape_cast %435 : vector<1x1x256xf32> to vector<1x256xf32>
    %437 = vector.broadcast %436 : vector<1x256xf32> to vector<8x256xf32>
    %438 = arith.mulf %434, %437 : vector<8x256xf32>
    %439 = arith.addf %430, %438 : vector<8x256xf32>
    %440 = vector.extract_strided_slice %381 {offsets = [0, 1], sizes = [8, 255], strides = [1, 1]} : vector<8x256xf32> to vector<8x255xf32>
    %441 = vector.extract_strided_slice %381 {offsets = [0, 0], sizes = [8, 1], strides = [1, 1]} : vector<8x256xf32> to vector<8x1xf32>
    %442 = tpu.concatenate %440, %441 in 1 : vector<8x255xf32>, vector<8x1xf32> -> vector<8x256xf32>
    %c5_267 = arith.constant 5 : index
    %c0_268 = arith.constant 0 : index
    %c0_269 = arith.constant 0 : index
    %443 = vector.load %arg16[%c5_267, %c0_268, %c0_269] : memref<9x8x1xf32, #tpu.memory_space<vmem>>, vector<1x8x1xf32>
    %444 = vector.shape_cast %443 : vector<1x8x1xf32> to vector<8x1xf32>
    %445 = vector.broadcast %444 : vector<8x1xf32> to vector<8x256xf32>
    %446 = arith.mulf %442, %445 : vector<8x256xf32>
    %c5_270 = arith.constant 5 : index
    %c0_271 = arith.constant 0 : index
    %c0_272 = arith.constant 0 : index
    %447 = vector.load %arg2[%c5_270, %c0_271, %c0_272] : memref<9x1x256xf32, #tpu.memory_space<vmem>>, vector<1x1x256xf32>
    %448 = vector.shape_cast %447 : vector<1x1x256xf32> to vector<1x256xf32>
    %449 = vector.broadcast %448 : vector<1x256xf32> to vector<8x256xf32>
    %450 = arith.mulf %446, %449 : vector<8x256xf32>
    %451 = arith.addf %439, %450 : vector<8x256xf32>
    %452 = vector.extract_strided_slice %381 {offsets = [0, 15], sizes = [8, 241], strides = [1, 1]} : vector<8x256xf32> to vector<8x241xf32>
    %453 = vector.extract_strided_slice %381 {offsets = [0, 0], sizes = [8, 15], strides = [1, 1]} : vector<8x256xf32> to vector<8x15xf32>
    %454 = tpu.concatenate %452, %453 in 1 : vector<8x241xf32>, vector<8x15xf32> -> vector<8x256xf32>
    %c6_273 = arith.constant 6 : index
    %c0_274 = arith.constant 0 : index
    %c0_275 = arith.constant 0 : index
    %455 = vector.load %arg16[%c6_273, %c0_274, %c0_275] : memref<9x8x1xf32, #tpu.memory_space<vmem>>, vector<1x8x1xf32>
    %456 = vector.shape_cast %455 : vector<1x8x1xf32> to vector<8x1xf32>
    %457 = vector.broadcast %456 : vector<8x1xf32> to vector<8x256xf32>
    %458 = arith.mulf %454, %457 : vector<8x256xf32>
    %c6_276 = arith.constant 6 : index
    %c0_277 = arith.constant 0 : index
    %c0_278 = arith.constant 0 : index
    %459 = vector.load %arg2[%c6_276, %c0_277, %c0_278] : memref<9x1x256xf32, #tpu.memory_space<vmem>>, vector<1x1x256xf32>
    %460 = vector.shape_cast %459 : vector<1x1x256xf32> to vector<1x256xf32>
    %461 = vector.broadcast %460 : vector<1x256xf32> to vector<8x256xf32>
    %462 = arith.mulf %458, %461 : vector<8x256xf32>
    %463 = arith.addf %451, %462 : vector<8x256xf32>
    %464 = vector.extract_strided_slice %381 {offsets = [0, 16], sizes = [8, 240], strides = [1, 1]} : vector<8x256xf32> to vector<8x240xf32>
    %465 = vector.extract_strided_slice %381 {offsets = [0, 0], sizes = [8, 16], strides = [1, 1]} : vector<8x256xf32> to vector<8x16xf32>
    %466 = tpu.concatenate %464, %465 in 1 : vector<8x240xf32>, vector<8x16xf32> -> vector<8x256xf32>
    %c7_279 = arith.constant 7 : index
    %c0_280 = arith.constant 0 : index
    %c0_281 = arith.constant 0 : index
    %467 = vector.load %arg16[%c7_279, %c0_280, %c0_281] : memref<9x8x1xf32, #tpu.memory_space<vmem>>, vector<1x8x1xf32>
    %468 = vector.shape_cast %467 : vector<1x8x1xf32> to vector<8x1xf32>
    %469 = vector.broadcast %468 : vector<8x1xf32> to vector<8x256xf32>
    %470 = arith.mulf %466, %469 : vector<8x256xf32>
    %c7_282 = arith.constant 7 : index
    %c0_283 = arith.constant 0 : index
    %c0_284 = arith.constant 0 : index
    %471 = vector.load %arg2[%c7_282, %c0_283, %c0_284] : memref<9x1x256xf32, #tpu.memory_space<vmem>>, vector<1x1x256xf32>
    %472 = vector.shape_cast %471 : vector<1x1x256xf32> to vector<1x256xf32>
    %473 = vector.broadcast %472 : vector<1x256xf32> to vector<8x256xf32>
    %474 = arith.mulf %470, %473 : vector<8x256xf32>
    %475 = arith.addf %463, %474 : vector<8x256xf32>
    %476 = vector.extract_strided_slice %381 {offsets = [0, 17], sizes = [8, 239], strides = [1, 1]} : vector<8x256xf32> to vector<8x239xf32>
    %477 = vector.extract_strided_slice %381 {offsets = [0, 0], sizes = [8, 17], strides = [1, 1]} : vector<8x256xf32> to vector<8x17xf32>
    %478 = tpu.concatenate %476, %477 in 1 : vector<8x239xf32>, vector<8x17xf32> -> vector<8x256xf32>
    %c8_285 = arith.constant 8 : index
    %c0_286 = arith.constant 0 : index
    %c0_287 = arith.constant 0 : index
    %479 = vector.load %arg16[%c8_285, %c0_286, %c0_287] : memref<9x8x1xf32, #tpu.memory_space<vmem>>, vector<1x8x1xf32>
    %480 = vector.shape_cast %479 : vector<1x8x1xf32> to vector<8x1xf32>
    %481 = vector.broadcast %480 : vector<8x1xf32> to vector<8x256xf32>
    %482 = arith.mulf %478, %481 : vector<8x256xf32>
    %c8_288 = arith.constant 8 : index
    %c0_289 = arith.constant 0 : index
    %c0_290 = arith.constant 0 : index
    %483 = vector.load %arg2[%c8_288, %c0_289, %c0_290] : memref<9x1x256xf32, #tpu.memory_space<vmem>>, vector<1x1x256xf32>
    %484 = vector.shape_cast %483 : vector<1x1x256xf32> to vector<1x256xf32>
    %485 = vector.broadcast %484 : vector<1x256xf32> to vector<8x256xf32>
    %486 = arith.mulf %482, %485 : vector<8x256xf32>
    %487 = arith.addf %475, %486 : vector<8x256xf32>
    %c0_291 = arith.constant 0 : index
    %c0_292 = arith.constant 0 : index
    %488 = vector.load %arg17[%c0_291, %c0_292] : memref<8x1xf32, #tpu.memory_space<vmem>>, vector<8x1xf32>
    %489 = vector.broadcast %488 : vector<8x1xf32> to vector<8x256xf32>
    %490 = arith.mulf %487, %489 : vector<8x256xf32>
    %c0_293 = arith.constant 0 : index
    %c0_294 = arith.constant 0 : index
    %491 = vector.load %arg18[%c0_293, %c0_294] : memref<8x1xf32, #tpu.memory_space<vmem>>, vector<8x1xf32>
    %492 = vector.broadcast %491 : vector<8x1xf32> to vector<8x256xf32>
    %493 = arith.addf %490, %492 : vector<8x256xf32>
    %c0_295 = arith.constant 0 : index
    %c0_296 = arith.constant 0 : index
    %c0_297 = arith.constant 0 : index
    %494 = vector.load %arg1[%c0_295, %c0_296, %c0_297] : memref<1x8x256xf32, #tpu.memory_space<vmem>>, vector<1x8x256xf32>
    %495 = vector.shape_cast %494 : vector<1x8x256xf32> to vector<8x256xf32>
    %496 = arith.addf %493, %495 : vector<8x256xf32>
    %c0_298 = arith.constant 0 : index
    %c0_299 = arith.constant 0 : index
    %c0_300 = arith.constant 0 : index
    %497 = vector.load %arg19[%c0_298, %c0_299, %c0_300] : memref<1x8x256xf32, #tpu.memory_space<vmem>>, vector<1x8x256xf32>
    %498 = vector.shape_cast %497 : vector<1x8x256xf32> to vector<8x256xf32>
    %499 = vector.shape_cast %496 : vector<8x256xf32> to vector<1x8x256xf32>
    tpu.vector_store %arg19[%c0_298, %c0_299, %c0_300], %499 {strides = array<i32>} : memref<1x8x256xf32, #tpu.memory_space<vmem>>, vector<1x8x256xf32>,
    return
  }
  func.func @transform_0(%arg0: i32) -> (i32, i32, i32) {
    %c0_i32 = arith.constant 0 : i32
    %c0_i32_0 = arith.constant 0 : i32
    %c0_i32_1 = arith.constant 0 : i32
    return %arg0, %c0_i32, %c0_i32_0 : i32, i32, i32
  }
  func.func @transform_1(%arg0: i32) -> (i32, i32, i32) {
    %c0_i32 = arith.constant 0 : i32
    %c0_i32_0 = arith.constant 0 : i32
    %c0_i32_1 = arith.constant 0 : i32
    %c0_i32_2 = arith.constant 0 : i32
    return %c0_i32, %c0_i32_0, %c0_i32_1 : i32, i32, i32
  }
  func.func @transform_2(%arg0: i32) -> (i32, i32, i32) {
    %c0_i32 = arith.constant 0 : i32
    %c0_i32_0 = arith.constant 0 : i32
    %c0_i32_1 = arith.constant 0 : i32
    %c0_i32_2 = arith.constant 0 : i32
    return %c0_i32, %c0_i32_0, %c0_i32_1 : i32, i32, i32
  }
  func.func @transform_3(%arg0: i32) -> (i32, i32) {
    %c0_i32 = arith.constant 0 : i32
    %c0_i32_0 = arith.constant 0 : i32
    %c0_i32_1 = arith.constant 0 : i32
    return %c0_i32, %c0_i32_0 : i32, i32
  }
  func.func @transform_4(%arg0: i32) -> (i32, i32) {
    %c0_i32 = arith.constant 0 : i32
    %c0_i32_0 = arith.constant 0 : i32
    %c0_i32_1 = arith.constant 0 : i32
    return %c0_i32, %c0_i32_0 : i32, i32
  }
  func.func @transform_5(%arg0: i32) -> (i32, i32, i32) {
    %c0_i32 = arith.constant 0 : i32
    %c0_i32_0 = arith.constant 0 : i32
    %c0_i32_1 = arith.constant 0 : i32
    %c0_i32_2 = arith.constant 0 : i32
    return %c0_i32, %c0_i32_0, %c0_i32_1 : i32, i32, i32
  }
  func.func @transform_6(%arg0: i32) -> (i32, i32) {
    %c0_i32 = arith.constant 0 : i32
    %c0_i32_0 = arith.constant 0 : i32
    %c0_i32_1 = arith.constant 0 : i32
    return %c0_i32, %c0_i32_0 : i32, i32
  }
  func.func @transform_7(%arg0: i32) -> (i32, i32) {
    %c0_i32 = arith.constant 0 : i32
    %c0_i32_0 = arith.constant 0 : i32
    %c0_i32_1 = arith.constant 0 : i32
    return %c0_i32, %c0_i32_0 : i32, i32
  }
  func.func @transform_8(%arg0: i32) -> (i32, i32, i32) {
    %c0_i32 = arith.constant 0 : i32
    %c0_i32_0 = arith.constant 0 : i32
    %c0_i32_1 = arith.constant 0 : i32
    %c0_i32_2 = arith.constant 0 : i32
    return %c0_i32, %c0_i32_0, %c0_i32_1 : i32, i32, i32
  }
  func.func @transform_9(%arg0: i32) -> (i32, i32, i32) {
    %c0_i32 = arith.constant 0 : i32
    %c0_i32_0 = arith.constant 0 : i32
    %c0_i32_1 = arith.constant 0 : i32
    %c0_i32_2 = arith.constant 0 : i32
    return %c0_i32, %c0_i32_0, %c0_i32_1 : i32, i32, i32
  }
  func.func @transform_10(%arg0: i32) -> (i32, i32, i32) {
    %c0_i32 = arith.constant 0 : i32
    %c0_i32_0 = arith.constant 0 : i32
    %c0_i32_1 = arith.constant 0 : i32
    %c0_i32_2 = arith.constant 0 : i32
    return %c0_i32, %c0_i32_0, %c0_i32_1 : i32, i32, i32
  }
  func.func @transform_11(%arg0: i32) -> (i32, i32) {
    %c0_i32 = arith.constant 0 : i32
    %c0_i32_0 = arith.constant 0 : i32
    %c0_i32_1 = arith.constant 0 : i32
    return %c0_i32, %c0_i32_0 : i32, i32
  }
  func.func @transform_12(%arg0: i32) -> (i32, i32, i32) {
    %c0_i32 = arith.constant 0 : i32
    %c0_i32_0 = arith.constant 0 : i32
    %c0_i32_1 = arith.constant 0 : i32
    %c0_i32_2 = arith.constant 0 : i32
    return %c0_i32, %c0_i32_0, %c0_i32_1 : i32, i32, i32
  }
  func.func @transform_13(%arg0: i32) -> (i32, i32) {
    %c0_i32 = arith.constant 0 : i32
    %c0_i32_0 = arith.constant 0 : i32
    %c0_i32_1 = arith.constant 0 : i32
    return %c0_i32, %c0_i32_0 : i32, i32
  }
  func.func @transform_14(%arg0: i32) -> (i32, i32) {
    %c0_i32 = arith.constant 0 : i32
    %c0_i32_0 = arith.constant 0 : i32
    %c0_i32_1 = arith.constant 0 : i32
    return %c0_i32, %c0_i32_0 : i32, i32
  }
  func.func @transform_15(%arg0: i32) -> (i32, i32, i32) {
    %c0_i32 = arith.constant 0 : i32
    %c0_i32_0 = arith.constant 0 : i32
    %c0_i32_1 = arith.constant 0 : i32
    %c0_i32_2 = arith.constant 0 : i32
    return %c0_i32, %c0_i32_0, %c0_i32_1 : i32, i32, i32
  }
  func.func @transform_16(%arg0: i32) -> (i32, i32) {
    %c0_i32 = arith.constant 0 : i32
    %c0_i32_0 = arith.constant 0 : i32
    %c0_i32_1 = arith.constant 0 : i32
    return %c0_i32, %c0_i32_0 : i32, i32
  }
  func.func @transform_17(%arg0: i32) -> (i32, i32) {
    %c0_i32 = arith.constant 0 : i32
    %c0_i32_0 = arith.constant 0 : i32
    %c0_i32_1 = arith.constant 0 : i32
    return %c0_i32, %c0_i32_0 : i32, i32
  }
  func.func @transform_18(%arg0: i32) -> (i32, i32, i32) {
    %c0_i32 = arith.constant 0 : i32
    %c0_i32_0 = arith.constant 0 : i32
    %c0_i32_1 = arith.constant 0 : i32
    return %arg0, %c0_i32, %c0_i32_0 : i32, i32, i32
  }
}

</mosaic_0001>

<bundles_post_ra>
// kernel: tpu_custom_call.1
= control target key start
LH: loop header
LB: loop body
LE: loop exit
PB: predicated region body
PF: predicated region fallthrough
CT: control target
= control target key end

     0   :  { %s3553_s0 = inlined_call_operand.vmem [shape: f32[2,8,256], index: 0, kind: input, shape index: {}]   ;;  %s3554_s1 = inlined_call_operand.vmem [shape: f32[9,1,256], index: 1, kind: input, shape index: {}]   ;;  %s3555_s2 = inlined_call_operand.vmem [shape: f32[8,16,1], index: 2, kind: input, shape index: {}]   ;;  %s3556_s3 = inlined_call_operand.vmem [shape: f32[16,1], index: 3, kind: input, shape index: {}]   ;;  %s3557_s4 = inlined_call_operand.vmem [shape: f32[16,1], index: 4, kind: input, shape index: {}]   ;;  %s3558_s5 = inlined_call_operand.vmem [shape: f32[9,16,1], index: 5, kind: input, shape index: {}]   ;;  %s3559_s6 = inlined_call_operand.vmem [shape: f32[16,1], index: 6, kind: input, shape index: {}]   ;;  %s3560_s7 = inlined_call_operand.vmem [shape: f32[16,1], index: 7, kind: input, shape index: {}]   ;;  %s3561_s8 = inlined_call_operand.vmem [shape: f32[4,16,1], index: 8, kind: input, shape index: {}]   ;;  %s3562_s9 = inlined_call_operand.vmem [shape: f32[4,1,1], index: 9, kind: input, shape index: {}]   ;;  %s3563_s10 = inlined_call_operand.vmem [shape: f32[4,16,1], index: 10, kind: input, shape index: {}]   ;;  %s3564_s11 = inlined_call_operand.vmem [shape: f32[16,1], index: 11, kind: input, shape index: {}]   ;;  %s3565_s12 = inlined_call_operand.vmem [shape: f32[16,8,1], index: 12, kind: input, shape index: {}]   ;;  %s3566_s13 = inlined_call_operand.vmem [shape: f32[8,1], index: 13, kind: input, shape index: {}]   ;;  %s3567_s14 = inlined_call_operand.vmem [shape: f32[8,1], index: 14, kind: input, shape index: {}]   ;;  %s3568_s15 = inlined_call_operand.vmem [shape: f32[9,8,1], index: 15, kind: input, shape index: {}]   ;;  %s3569_s16 = inlined_call_operand.vmem [shape: f32[8,1], index: 16, kind: input, shape index: {}]   ;;  %s3570_s17 = inlined_call_operand.vmem [shape: f32[8,1], index: 17, kind: input, shape index: {}]   ;;  %s3571_s18 = inlined_call_operand.hbm [shape: f32[2,8,256], index: 18, kind: output, shape index: {}]  }
   0x1   :  { %3597 = sst [smem:[#allocation13_spill]] %s3553_s0 }
   0x2   :  { %3598 = sst [smem:[#allocation14_spill]] %s3554_s1 }
   0x3   :  { %3599 = sst [smem:[#allocation15_spill]] %s3555_s2 }
   0x4   :  { %3600 = sst [smem:[#allocation16_spill]] %s3556_s3 }
   0x5   :  { %3601 = sst [smem:[#allocation17_spill]] %s3557_s4 }
   0x6   :  { %23 = vsyncpa [#allocation4], 0 }
   0x7   :  { %25 = vsyncpa [#allocation4 + $0x1], 0  ;;  %s2678_s27 = smov 0   ;;  %s2680_s28 = smov 0  }
   0x8   :  { %s2682_s29 = smov 0   ;;  %s2684_s30 = smov 0  }
   0x9 LB: > { %3602 = sst [smem:[#allocation6_spill]] %s2559_s27  ;;  %s2699_s0 = sadd.s32 4294967295, %s2571_s30   ;;  %s2571_s30 = sphi %s2684_s30, %s3628_s30   ;;  %s2567_s29 = sphi %s2682_s29, %s3630_s29   ;;  %s2563_s28 = sphi %s2680_s28, %s3632_s28   ;;  %s2559_s27 = sphi %s2678_s27, %s3631_s27  }
   0xa   : > { %3603 = sst [smem:[#allocation7_spill]] %s2567_s29  ;;  %s2354_s19 = sadd.s32 4294967294, %s2571_s30  }
   0xb   : > { %s2703_s1 = sadd.s32 1, %s2571_s30   ;;  %s421_s20 = sadd.s32 1, %s2567_s29 }
   0xc   : > { %3604 = sst [smem:[#allocation8_spill]] %s2703_s1  ;;  %s418_s21 = ssub.s32 %s2571_s30, %s2703_s1 }
   0xd   : > { %p431_p0 = scmp.ne.s32.totalorder %s2567_s29, %s2563_s28  ;;  %p419_p1 = scmp.eq.s32.totalorder %s418_s21, 0 }
   0xe   : > { %p432_p2 = scmp.eq.s32.totalorder %s2699_s0, 1  ;;  %p437_p3 = scmp.ne.s32.totalorder %s2563_s28, %s2559_s27 }
   0xf   : > { %p438_p4 = scmp.eq.s32.totalorder %s2354_s19, 1  ;;  %p2357_p7 = scmp.ge.s32.totalorder %s2571_s30, 1 }
  0x10   : > { %s2714_s22 = scalar_select %p419_p1, %s2567_s29, %s421_s20  }
  0x11   : > { %p2716_p5 = por %p432_p2, %p431_p0  ;;  %p2720_p6 = por %p438_p4, %p437_p3 }
  0x12   : > { %3605 = sst [smem:[#allocation9_spill]] %s2714_s22  ;;  %p515_p8 = scmp.lt.s32.totalorder %s2571_s30, 3 }
  0x13   : > { %s3607_s23 = scalar_select %p2720_p6, 1, 0 }
  0x14   : > { %p516_p9 = pnand %p2357_p7, %p515_p8 }
  0x15   : > { %3608 = sst [smem:[#allocation10_spill]] %s3607_s23 }
  0x16   : > { %519 = sbr.rel (%p516_p9) target bundleno = 945 (0x3b1), region = 92 }
  0x1d   : > { %s3609_s26 = sld [smem:[#allocation15_spill]]  ;;  %v2573_v2 = vmov 0   ;;  %s3610_s3 = sld [smem:[#allocation16_spill]]  ;;  %v904_v21 = vld [vmem:[%s3558_s5 + $0x8] sm:$0xff]  ;;  %v903_v22 = vld [vmem:[%s3558_s5] sm:$0xff]  ;;  %v2383_v23 = vld [vmem:[%s3558_s5 + $0x18] sm:$0xff]  ;;  %v588_v41 = vlaneseq }
  0x1e   : > { %2508 = vset.pattern.permute.xlu1 %v2573_v2  ;;  %2507 = vset.pattern.permute.xlu0 %v2573_v2  ;;  %s3611_s4 = sld [smem:[#allocation17_spill]]  ;;  %v2382_v24 = vld [vmem:[%s3558_s5 + $0x10] sm:$0xff]  ;;  %v2386_v25 = vld [vmem:[%s3558_s5 + $0x28] sm:$0xff]  ;;  %v2385_v26 = vld [vmem:[%s3558_s5 + $0x20] sm:$0xff]  ;;  %p569_p10 = scmp.lt.s32.totalorder %s2699_s0, 1  ;;  %vm894_vm0 = vcmask 138240  }
  0x1f   : > { %v2389_v27 = vld [vmem:[%s3558_s5 + $0x38] sm:$0xff]  ;;  %v2388_v28 = vld [vmem:[%s3558_s5 + $0x30] sm:$0xff]  ;;  %v2392_v29 = vld [vmem:[%s3558_s5 + $0x48] sm:$0xff]  ;;  %v589_v42 = vshrl.u32 %v588_v41, 7  ;;  %s3612_s22 = sld [smem:[#allocation13_spill]]  ;;  %s3593_s29 = smov 17  }
  0x20   : > { %v2391_v30 = vld [vmem:[%s3558_s5 + $0x40] sm:$0xff]  ;;  %v2395_v31 = vld [vmem:[%s3558_s5 + $0x58] sm:$0xff]  ;;  %v2394_v32 = vld [vmem:[%s3558_s5 + $0x50] sm:$0xff]  ;;  %s570_s21 = scalar_select %p569_p10, %s2699_s0, 1  ;;  %vm949_vm1 = vcmask 130048   ;;  %vm1006_vm2 = vcmask 121856  }
  0x21   : > { %v2398_v33 = vld [vmem:[%s3558_s5 + $0x68] sm:$0xff]  ;;  %v2397_v34 = vld [vmem:[%s3558_s5 + $0x60] sm:$0xff]  ;;  %v2401_v35 = vld [vmem:[%s3558_s5 + $0x78] sm:$0xff]  ;;  %v2853_v45 = vsub.s32 1, %v589_v42  ;;  %v2857_v50 = vsub.s32 0, %v589_v42  ;;  %s3591_s1 = smov 16  }
  0x22   : > { %v2400_v36 = vld [vmem:[%s3558_s5 + $0x70] sm:$0xff]  ;;  %v2404_v37 = vld [vmem:[%s3558_s5 + $0x88] sm:$0xff]  ;;  %v2403_v38 = vld [vmem:[%s3558_s5 + $0x80] sm:$0xff]  ;;  %s2457_s19 = sshll.u32 %s570_s21, 4  ;;  %s3589_s24 = smov 15   ;;  %vm1063_vm3 = vcmask 7168  }
  0x23   : > { %v2361_v0 = vld [vmem:[%s3609_s26 + $0x10] sm:$0xff]  ;;  %v574_v1 = vld [vmem:[%s3609_s26] sm:$0xff]  ;;  %v2362_v3 = vld [vmem:[%s3609_s26 + $0x18] sm:$0xff]  ;;  %s3583_s25 = smov 1   ;;  %s3581_s21 = smov 127   ;;  %vm1156_vm4 = vcmask 1039360  }
  0x24   : > { %613 = vperm.xlu1 %2508, %v2361_v0   ;;  %579 = vperm.xlu0 %2507, %v574_v1   ;;  %v575_v4 = vld [vmem:[%s3609_s26 + $0x8] sm:$0xff]  ;;  %v2364_v6 = vld [vmem:[%s3609_s26 + $0x20] sm:$0xff]  ;;  %v2368_v7 = vld [vmem:[%s3609_s26 + $0x38] sm:$0xff]  ;;  %s3587_s27 = smov 112   ;;  %s3585_s23 = smov 111   ;;  %vm1213_vm5 = vcmask 924672  }
  0x25   : > { %v2365_v5 = vld [vmem:[%s3609_s26 + $0x28] sm:$0xff]  ;;  %v2367_v8 = vld [vmem:[%s3609_s26 + $0x30] sm:$0xff]  ;;  %v2370_v10 = vld [vmem:[%s3609_s26 + $0x40] sm:$0xff]  ;;  %s2851_s20 = scalar_lea.vmem %s3612_s22, %s2457_s19  ;;  %s3579_s19 = smov 113   ;;  %vm1270_vm6 = vcmask 916480   ;;  %vm1327_vm7 = vcmask 908288  }
  0x26   : > { %v2371_v9 = vld [vmem:[%s3609_s26 + $0x48] sm:$0xff]  ;;  %v2374_v11 = vld [vmem:[%s3609_s26 + $0x58] sm:$0xff]  ;;  %v2373_v12 = vld [vmem:[%s3609_s26 + $0x50] sm:$0xff]  ;;  %s3625_s22 = smov 111  }
  0x27   : > { %v2377_v13 = vld [vmem:[%s3609_s26 + $0x68] sm:$0xff]  ;;  %v2376_v14 = vld [vmem:[%s3609_s26 + $0x60] sm:$0xff]  ;;  %v2380_v15 = vld [vmem:[%s3609_s26 + $0x78] sm:$0xff] }
  0x28   : > { %618 = vperm.xlu1 %2508, %v2362_v3   ;;  %584 = vperm.xlu0 %2507, %v575_v4   ;;  %v2379_v16 = vld [vmem:[%s3609_s26 + $0x70] sm:$0xff]  ;;  %v845_v17 = vld [vmem:[%s3610_s3 + $0x8] sm:$0xff]  ;;  %v844_v18 = vld [vmem:[%s3610_s3] sm:$0xff]  ;;  %s3618_s3 = smov 17  }
  0x29   : > { %v861_v19 = vld [vmem:[%s3611_s4 + $0x8] sm:$0xff]  ;;  %v860_v20 = vld [vmem:[%s3611_s4] sm:$0xff]  ;;  %s3619_s4 = smov 16  }
  0x2a   : > { %v1377_v39 = vld [vmem:[%s3559_s6 + $0x8] sm:$0xff]  ;;  %v1376_v40 = vld [vmem:[%s3559_s6] sm:$0xff] }
  0x2b   : > { %v2363_v48 = vld [vmem:[%s2851_s20 + $0x1] ss:$8 sm:$0x3]  ;;  %v576_v49 = vld [vmem:[%s2851_s20] ss:$8 sm:$0x3] }
  0x2c   : > { %652 = vperm.xlu1 %2508, %v2365_v5   ;;  %647 = vperm.xlu0 %2507, %v2364_v6   ;;  %v629_v51 = vrot.slane %v2363_v48, %v2853_v45  ;;  %v595_v52 = vrot.slane %v576_v49, %v2853_v45  ;;  %v2366_v54 = vld [vmem:[%s2851_s20 + $0x2] ss:$8 sm:$0x3]  ;;  %v625_v56 = vrot.slane %v2363_v48, %v2857_v50  ;;  %v2369_v58 = vld [vmem:[%s2851_s20 + $0x3] ss:$8 sm:$0x3] }
  0x2d   : > { %v591_v57 = vrot.slane %v576_v49, %v2857_v50  ;;  %v663_v59 = vrot.slane %v2366_v54, %v2853_v45  ;;  %v659_v2 = vrot.slane %v2366_v54, %v2857_v50  ;;  %v697_v3 = vrot.slane %v2369_v58, %v2853_v45  ;;  %v2372_v4 = vld [vmem:[%s2851_s20 + $0x4] ss:$8 sm:$0x3] }
  0x30   : > { %686 = vperm.xlu1 %2508, %v2368_v7   ;;  %681 = vperm.xlu0 %2507, %v2367_v8  }
  0x34   : > { %720 = vperm.xlu1 %2508, %v2371_v9   ;;  %715 = vperm.xlu0 %2507, %v2370_v10  }
  0x38   : > { %754 = vperm.xlu1 %2508, %v2374_v11   ;;  %749 = vperm.xlu0 %2507, %v2373_v12   ;;  %v693_v11 = vrot.slane %v2369_v58, %v2857_v50  ;;  %v2375_v12 = vld [vmem:[%s2851_s20 + $0x5] ss:$8 sm:$0x3] }
  0x3c   : > { %788 = vperm.xlu1 %2508, %v2377_v13   ;;  %783 = vperm.xlu0 %2507, %v2376_v14  }
  0x40   : > { %822 = vperm.xlu1 %2508, %v2380_v15   ;;  %817 = vperm.xlu0 %2507, %v2379_v16   ;;  %v731_v16 = vrot.slane %v2372_v4, %v2853_v45 }
  0x44   : > { %853 = vperm.xlu1 %2508, %v845_v17   ;;  %848 = vperm.xlu0 %2507, %v844_v18  }
  0x48   : > { %869 = vperm.xlu1 %2508, %v861_v19   ;;  %864 = vperm.xlu0 %2507, %v860_v20  }
  0x4c   : > { %912 = vperm.xlu1 %2508, %v904_v21   ;;  %907 = vperm.xlu0 %2507, %v903_v22   ;;  %v2378_v22 = vld [vmem:[%s2851_s20 + $0x6] ss:$8 sm:$0x3] }
  0x4d   : > { %v795_v49 = vrot.slane %v2378_v22, %v2857_v50 }
  0x50   : > { %968 = vperm.xlu1 %2508, %v2383_v23   ;;  %963 = vperm.xlu0 %2507, %v2382_v24  }
  0x54   : > { %1025 = vperm.xlu1 %2508, %v2386_v25   ;;  %1020 = vperm.xlu0 %2507, %v2385_v26   ;;  %v727_v25 = vrot.slane %v2372_v4, %v2857_v50  ;;  %v765_v26 = vrot.slane %v2375_v12, %v2853_v45 }
  0x58   : > { %1082 = vperm.xlu1 %2508, %v2389_v27   ;;  %1077 = vperm.xlu0 %2507, %v2388_v28  }
  0x5c   : > { %1120 = vperm.xlu1 %2508, %v2392_v29   ;;  %1115 = vperm.xlu0 %2507, %v2391_v30  }
  0x60   : > { %1177 = vperm.xlu1 %2508, %v2395_v31   ;;  %1172 = vperm.xlu0 %2507, %v2394_v32  }
  0x64   : > { %1234 = vperm.xlu1 %2508, %v2398_v33   ;;  %1229 = vperm.xlu0 %2507, %v2397_v34   ;;  %v761_v34 = vrot.slane %v2375_v12, %v2857_v50 }
  0x68   : > { %1291 = vperm.xlu1 %2508, %v2401_v35   ;;  %1286 = vperm.xlu0 %2507, %v2400_v36   ;;  %v799_v36 = vrot.slane %v2378_v22, %v2853_v45 }
  0x6c   : > { %1348 = vperm.xlu1 %2508, %v2404_v37   ;;  %1343 = vperm.xlu0 %2507, %v2403_v38  }
  0x70   : > { %1385 = vperm.xlu1 %2508, %v1377_v39   ;;  %1380 = vperm.xlu0 %2507, %v1376_v40  }
  0xa3   : > { %v614_v43 = vpop.permute.xlu1 %613  ;;  %v580_v44 = vpop.permute.xlu0 %579 }
  0xa4   : > { %v633_v60 = vmul.f32 %v629_v51, %v614_v43  ;;  %v599_v61 = vmul.f32 %v595_v52, %v580_v44  ;;  %v632_v5 = vmul.f32 %v625_v56, %v614_v43  ;;  %v598_v6 = vmul.f32 %v591_v57, %v580_v44 }
  0xa6   : > { %v637_v13 = vadd.f32 %v633_v60, %v599_v61  ;;  %v636_v23 = vadd.f32 %v632_v5, %v598_v6 }
  0xa7   : > { %v619_v46 = vpop.permute.xlu1 %618  ;;  %v585_v47 = vpop.permute.xlu0 %584 }
  0xa8   : > { %v635_v62 = vmul.f32 %v629_v51, %v619_v46  ;;  %v601_v63 = vmul.f32 %v595_v52, %v585_v47  ;;  %v634_v7 = vmul.f32 %v625_v56, %v619_v46  ;;  %v600_v8 = vmul.f32 %v591_v57, %v585_v47  ;;  %v2381_v46 = vld [vmem:[%s2851_s20 + $0x7] ss:$8 sm:$0x3] }
  0xa9   : > { %v833_v60 = vrot.slane %v2381_v46, %v2853_v45 }
  0xaa   : > { %v639_v14 = vadd.f32 %v635_v62, %v601_v63  ;;  %v638_v24 = vadd.f32 %v634_v7, %v600_v8 }
  0xab   : > { %v653_v53 = vpop.permute.xlu1 %652  ;;  %v648_v55 = vpop.permute.xlu0 %647 }
  0xac   : > { %v669_v9 = vmul.f32 %v663_v59, %v653_v53  ;;  %v667_v10 = vmul.f32 %v663_v59, %v648_v55  ;;  %v668_v18 = vmul.f32 %v659_v2, %v653_v53  ;;  %v666_v19 = vmul.f32 %v659_v2, %v648_v55 }
  0xad   : > { %v829_v59 = vrot.slane %v2381_v46, %v2857_v50 }
  0xae   : > { %v673_v27 = vadd.f32 %v669_v9, %v639_v14  ;;  %v671_v28 = vadd.f32 %v667_v10, %v637_v13  ;;  %v672_v37 = vadd.f32 %v668_v18, %v638_v24  ;;  %v670_v38 = vadd.f32 %v666_v19, %v636_v23 }
  0xaf   : > { %v687_v0 = vpop.permute.xlu1 %686  ;;  %v682_v1 = vpop.permute.xlu0 %681 }
  0xb0   : > { %v703_v20 = vmul.f32 %v697_v3, %v687_v0  ;;  %v701_v21 = vmul.f32 %v697_v3, %v682_v1  ;;  %v702_v29 = vmul.f32 %v693_v11, %v687_v0  ;;  %v700_v30 = vmul.f32 %v693_v11, %v682_v1 }
  0xb2   : > { %v707_v39 = vadd.f32 %v703_v20, %v673_v27  ;;  %v705_v40 = vadd.f32 %v701_v21, %v671_v28  ;;  %v706_v47 = vadd.f32 %v702_v29, %v672_v37  ;;  %v704_v48 = vadd.f32 %v700_v30, %v670_v38 }
  0xb3   : > { %v721_v15 = vpop.permute.xlu1 %720  ;;  %v716_v17 = vpop.permute.xlu0 %715 }
  0xb4   : > { %v737_v31 = vmul.f32 %v731_v16, %v721_v15  ;;  %v735_v32 = vmul.f32 %v731_v16, %v716_v17  ;;  %v736_v41 = vmul.f32 %v727_v25, %v721_v15  ;;  %v734_v42 = vmul.f32 %v727_v25, %v716_v17 }
  0xb6   : > { %v741_v51 = vadd.f32 %v737_v31, %v707_v39  ;;  %v739_v52 = vadd.f32 %v735_v32, %v705_v40  ;;  %v740_v61 = vadd.f32 %v736_v41, %v706_v47  ;;  %v738_v62 = vadd.f32 %v734_v42, %v704_v48 }
  0xb7   : > { %v755_v33 = vpop.permute.xlu1 %754  ;;  %v750_v35 = vpop.permute.xlu0 %749 }
  0xb8   : > { %v771_v43 = vmul.f32 %v765_v26, %v755_v33  ;;  %v769_v44 = vmul.f32 %v765_v26, %v750_v35  ;;  %v770_v53 = vmul.f32 %v761_v34, %v755_v33  ;;  %v768_v54 = vmul.f32 %v761_v34, %v750_v35 }
  0xba   : > { %v775_v63 = vadd.f32 %v771_v43, %v741_v51  ;;  %v773_v0 = vadd.f32 %v769_v44, %v739_v52  ;;  %v774_v3 = vadd.f32 %v770_v53, %v740_v61  ;;  %v772_v4 = vadd.f32 %v768_v54, %v738_v62  ;;  %v1393_v51 = vld [vmem:[%s3560_s7 + $0x8] sm:$0xff]  ;;  %v1392_v52 = vld [vmem:[%s3560_s7] sm:$0xff] }
  0xbb   : > { %v789_v55 = vpop.permute.xlu1 %788  ;;  %v784_v56 = vpop.permute.xlu0 %783 }
  0xbc   : > { %v805_v57 = vmul.f32 %v799_v36, %v789_v55  ;;  %v803_v58 = vmul.f32 %v799_v36, %v784_v56  ;;  %v804_v1 = vmul.f32 %v795_v49, %v789_v55  ;;  %v802_v2 = vmul.f32 %v795_v49, %v784_v56 }
  0xbe   : > { %v809_v5 = vadd.f32 %v805_v57, %v775_v63  ;;  %v807_v6 = vadd.f32 %v803_v58, %v773_v0  ;;  %v808_v13 = vadd.f32 %v804_v1, %v774_v3  ;;  %v806_v14 = vadd.f32 %v802_v2, %v772_v4 }
  0xbf   : > { %v823_v7 = vpop.permute.xlu1 %822  ;;  %v818_v8 = vpop.permute.xlu0 %817 }
  0xc0   : > { %v838_v9 = vmul.f32 %v829_v59, %v823_v7  ;;  %v839_v10 = vmul.f32 %v833_v60, %v823_v7  ;;  %v836_v11 = vmul.f32 %v829_v59, %v818_v8  ;;  %v837_v12 = vmul.f32 %v833_v60, %v818_v8 }
  0xc2   : > { %v843_v15 = vadd.f32 %v839_v10, %v809_v5  ;;  %v841_v16 = vadd.f32 %v837_v12, %v807_v6  ;;  %v842_v19 = vadd.f32 %v838_v9, %v808_v13  ;;  %v840_v20 = vadd.f32 %v836_v11, %v806_v14 }
  0xc3   : > { %v854_v17 = vpop.permute.xlu1 %853  ;;  %v849_v18 = vpop.permute.xlu0 %848 }
  0xc4   : > { %v859_v21 = vmul.f32 %v854_v17, %v843_v15  ;;  %v857_v22 = vmul.f32 %v849_v18, %v841_v16  ;;  %v858_v25 = vmul.f32 %v854_v17, %v842_v19  ;;  %v856_v26 = vmul.f32 %v849_v18, %v840_v20 }
  0xc7   : > { %v870_v23 = vpop.permute.xlu1 %869  ;;  %v865_v24 = vpop.permute.xlu0 %864 }
  0xc8   : > { %v875_v27 = vadd.f32 %v870_v23, %v859_v21  ;;  %v873_v28 = vadd.f32 %v865_v24, %v857_v22  ;;  %v874_v29 = vadd.f32 %v870_v23, %v858_v25  ;;  %v872_v31 = vadd.f32 %v865_v24, %v856_v26 }
  0xca   : > { %v879_v30 = vmax.f32 %v875_v27, 0.0  ;;  %v877_v32 = vmax.f32 %v873_v28, 0.0  ;;  %v878_v35 = vmax.f32 %v874_v29, 0.0  ;;  %v876_v36 = vmax.f32 %v872_v31, 0.0 }
  0xcb   : > { %v2881_v33 = vpop.permute.xlu1 %912  ;;  %v2883_v34 = vpop.permute.xlu0 %907 }
  0xcc   : > { %884 = vrot.lane.b32.xlu1 %v879_v30, %s3593_s29  ;;  %882 = vrot.lane.b32.xlu0 %v877_v32, %s3593_s29 }
  0xcf   : > { %v2887_v37 = vpop.permute.xlu1 %968  ;;  %v2889_v38 = vpop.permute.xlu0 %963 }
  0xd0   : > { %892 = vrot.lane.b32.xlu1 %v878_v35, %s3593_s29  ;;  %890 = vrot.lane.b32.xlu0 %v876_v36, %s3593_s29  ;;  %s3620_s29 = smov 15  }
  0xd3   : > { %v2893_v39 = vpop.permute.xlu1 %1025  ;;  %v2895_v40 = vpop.permute.xlu0 %1020 }
  0xd4   : > { %941 = vrot.lane.b32.xlu1 %v879_v30, %s3591_s1  ;;  %939 = vrot.lane.b32.xlu0 %v877_v32, %s3591_s1 }
  0xd7   : > { %v2899_v41 = vpop.permute.xlu1 %1082  ;;  %v2901_v42 = vpop.permute.xlu0 %1077 }
  0xd8   : > { %947 = vrot.lane.b32.xlu1 %v878_v35, %s3591_s1  ;;  %945 = vrot.lane.b32.xlu0 %v876_v36, %s3591_s1  ;;  %s3621_s1 = smov 1  }
  0xdb   : > { %v1121_v43 = vpop.permute.xlu1 %1120  ;;  %v1116_v44 = vpop.permute.xlu0 %1115 }
  0xdc   : > { %v2905_v46 = vmul.f32 %v1121_v43, %v878_v35  ;;  %v2907_v47 = vmul.f32 %v1121_v43, %v879_v30  ;;  %v2909_v48 = vmul.f32 %v1116_v44, %v876_v36  ;;  %v2911_v49 = vmul.f32 %v1116_v44, %v877_v32  ;;  %998 = vrot.lane.b32.xlu1 %v879_v30, %s3589_s24 }
  0xdd   : > { %996 = vrot.lane.b32.xlu0 %v877_v32, %s3589_s24 }
  0xdf   : > { %v2943_v53 = vpop.permute.xlu1 %1177  ;;  %v2945_v54 = vpop.permute.xlu0 %1172 }
  0xe0   : > { %1004 = vrot.lane.b32.xlu1 %v878_v35, %s3589_s24 }
  0xe1   : > { %1002 = vrot.lane.b32.xlu0 %v876_v36, %s3589_s24  ;;  %s3622_s24 = smov 127  }
  0xe3   : > { %v2947_v55 = vpop.permute.xlu1 %1234  ;;  %v2949_v56 = vpop.permute.xlu0 %1229 }
  0xe4   : > { %1055 = vrot.lane.b32.xlu1 %v879_v30, %s3583_s25 }
  0xe5   : > { %1053 = vrot.lane.b32.xlu0 %v877_v32, %s3583_s25 }
  0xe7   : > { %v2951_v57 = vpop.permute.xlu1 %1291  ;;  %v2953_v58 = vpop.permute.xlu0 %1286 }
  0xe8   : > { %1061 = vrot.lane.b32.xlu1 %v878_v35, %s3583_s25 }
  0xe9   : > { %1059 = vrot.lane.b32.xlu0 %v876_v36, %s3583_s25 }
  0xeb   : > { %v2955_v59 = vpop.permute.xlu1 %1348  ;;  %v2957_v60 = vpop.permute.xlu0 %1343 }
  0xec   : > { %1150 = vrot.lane.b32.xlu1 %v877_v32, %s3581_s21 }
  0xed   : > { %1148 = vrot.lane.b32.xlu0 %v876_v36, %s3581_s21 }
  0xef   : > { %v2959_v61 = vpop.permute.xlu1 %1385  ;;  %v2961_v62 = vpop.permute.xlu0 %1380 }
  0xf0   : > { %1154 = vrot.lane.b32.xlu1 %v879_v30, %s3581_s21  ;;  %3613 = vst [vmem:[#allocation11_spill] sm:$0xff] %v2959_v61  ;;  %3614 = vst [vmem:[#allocation12_spill] sm:$0xff] %v2961_v62 }
  0xf1   : > { %1152 = vrot.lane.b32.xlu0 %v878_v35, %s3581_s21  ;;  %s3624_s21 = smov 112  }
  0xf4   : > { %1207 = vrot.lane.b32.xlu1 %v877_v32, %s3579_s19 }
  0xf5   : > { %1205 = vrot.lane.b32.xlu0 %v876_v36, %s3579_s19 }
  0xf8   : > { %1211 = vrot.lane.b32.xlu1 %v879_v30, %s3579_s19 }
  0xf9   : > { %1209 = vrot.lane.b32.xlu0 %v878_v35, %s3579_s19  ;;  %s3615_s19 = sld [smem:[#allocation14_spill]] }
  0xfc   : > { %1264 = vrot.lane.b32.xlu1 %v877_v32, %s3587_s27 }
  0xfd   : > { %1262 = vrot.lane.b32.xlu0 %v876_v36, %s3587_s27 }
  0xff   : > { %v2393_v14 = vld [vmem:[%s3615_s19 + $0x8] sm:$0x3]  ;;  %v919_v16 = vld [vmem:[%s3615_s19] sm:$0x3]  ;;  %v2384_v17 = vld [vmem:[%s3615_s19 + $0x2] sm:$0x3] }
 0x100   : > { %1268 = vrot.lane.b32.xlu1 %v879_v30, %s3587_s27  ;;  %v1133_v18 = vrot.slane %v2393_v14, %v2857_v50  ;;  %v1137_v19 = vrot.slane %v2393_v14, %v2853_v45  ;;  %v2387_v20 = vld [vmem:[%s3615_s19 + $0x4] sm:$0x3]  ;;  %v2982_v22 = vrot.slane %v919_v16, %v2857_v50  ;;  %v2390_v23 = vld [vmem:[%s3615_s19 + $0x6] sm:$0x3]  ;;  %v2990_v25 = vrot.slane %v919_v16, %v2853_v45 }
 0x101   : > { %1266 = vrot.lane.b32.xlu0 %v878_v35, %s3587_s27  ;;  %v981_v26 = vrot.slane %v2384_v17, %v2857_v50  ;;  %v985_v27 = vrot.slane %v2384_v17, %v2853_v45  ;;  %v2995_v28 = vrot.slane %v2387_v20, %v2857_v50  ;;  %v2998_v29 = vrot.slane %v2387_v20, %v2853_v45  ;;  %s3623_s27 = smov 113  }
 0x102   : > { %v3004_v31 = vmul.f32 %v1133_v18, %v2905_v46  ;;  %v3018_v44 = vmul.f32 %v1133_v18, %v2909_v48 }
 0x104   : > { %1321 = vrot.lane.b32.xlu1 %v877_v32, %s3585_s23  ;;  %v3007_v32 = vmul.f32 %v1137_v19, %v2907_v47 }
 0x105   : > { %1319 = vrot.lane.b32.xlu0 %v876_v36, %s3585_s23  ;;  %v3013_v36 = vrot.slane %v2390_v23, %v2853_v45 }
 0x108   : > { %1325 = vrot.lane.b32.xlu1 %v879_v30, %s3585_s23  ;;  %v2396_v30 = vld [vmem:[%s3615_s19 + $0xa] sm:$0x3] }
 0x109   : > { %1323 = vrot.lane.b32.xlu0 %v878_v35, %s3585_s23  ;;  %v3010_v35 = vrot.slane %v2390_v23, %v2857_v50  ;;  %v3030_v17 = vrot.slane %v2396_v30, %v2857_v50  ;;  %v3033_v20 = vrot.slane %v2396_v30, %v2853_v45  ;;  %s2582_s23 = smov [#allocation3]  }
 0x10a   : > { %s2513_s25 = sshll.u32 %s2582_s23, 4  ;;  %s2514_s25 = int_to_ptr.vmem [resolvable:$false] %s2513_s25 }
 0x10c   : > { %1401 = vperm.xlu1 %2508, %v1393_v51   ;;  %v3021_v51 = vmul.f32 %v1137_v19, %v2911_v49 }
 0x10d   : > { %1396 = vperm.xlu0 %2507, %v1392_v52  }
 0x13e   : > { %v885_v63 = vpop.permute.xlu1 %884  ;;  %v883_v0 = vpop.permute.xlu0 %882 }
 0x142   : > { %v893_v1 = vpop.permute.xlu1 %892  ;;  %v891_v2 = vpop.permute.xlu0 %890 }
 0x143   : > { %v896_v46 = vsel %vm894_vm0, %v893_v1, %v885_v63  ;;  %v902_v52 = vsel %vm894_vm0, %v885_v63, %v893_v1  ;;  %v895_v48 = vsel %vm894_vm0, %v891_v2, %v883_v0  ;;  %v901_v49 = vsel %vm894_vm0, %v883_v0, %v891_v2 }
 0x144   : > { %v917_v1 = vmul.f32 %v2881_v33, %v902_v52  ;;  %v918_v19 = vmul.f32 %v2881_v33, %v896_v46  ;;  %v916_v46 = vmul.f32 %v2883_v34, %v895_v48 }
 0x146   : > { %v942_v3 = vpop.permute.xlu1 %941  ;;  %v940_v4 = vpop.permute.xlu0 %939 }
 0x14a   : > { %v948_v5 = vpop.permute.xlu1 %947  ;;  %v946_v6 = vpop.permute.xlu0 %945 }
 0x14b   : > { %v951_v14 = vsel %vm949_vm1, %v948_v5, %v942_v3  ;;  %v957_v16 = vsel %vm949_vm1, %v942_v3, %v948_v5  ;;  %v950_v18 = vsel %vm949_vm1, %v946_v6, %v940_v4  ;;  %v956_v63 = vsel %vm949_vm1, %v940_v4, %v946_v6 }
 0x14c   : > { %v973_v30 = vmul.f32 %v2887_v37, %v957_v16  ;;  %v974_v62 = vmul.f32 %v2887_v37, %v951_v14  ;;  %v971_v4 = vmul.f32 %v2889_v38, %v956_v63  ;;  %v972_v33 = vmul.f32 %v2889_v38, %v950_v18 }
 0x14d   : > { %v934_v18 = vmul.f32 %v2990_v25, %v918_v19 }
 0x14e   : > { %v999_v7 = vpop.permute.xlu1 %998  ;;  %v991_v16 = vmul.f32 %v985_v27, %v974_v62  ;;  %v989_v63 = vmul.f32 %v985_v27, %v972_v33 }
 0x14f   : > { %v997_v8 = vpop.permute.xlu0 %996 }
 0x152   : > { %v1005_v9 = vpop.permute.xlu1 %1004 }
 0x153   : > { %v1003_v10 = vpop.permute.xlu0 %1002  ;;  %v1008_v3 = vsel %vm1006_vm2, %v1005_v9, %v999_v7  ;;  %v1014_v5 = vsel %vm1006_vm2, %v999_v7, %v1005_v9  ;;  %v915_v9 = vmul.f32 %v2883_v34, %v901_v49 }
 0x154   : > { %v1007_v0 = vsel %vm1006_vm2, %v1003_v10, %v997_v8  ;;  %v1013_v2 = vsel %vm1006_vm2, %v997_v8, %v1003_v10  ;;  %v1030_v37 = vmul.f32 %v2893_v39, %v1014_v5  ;;  %v1031_v52 = vmul.f32 %v2893_v39, %v1008_v3 }
 0x155   : > { %v1028_v8 = vmul.f32 %v2895_v40, %v1013_v2  ;;  %v1029_v10 = vmul.f32 %v2895_v40, %v1007_v0  ;;  %v933_v39 = vmul.f32 %v2982_v22, %v917_v1  ;;  %v988_v40 = vmul.f32 %v981_v26, %v971_v4 }
 0x156   : > { %v1056_v11 = vpop.permute.xlu1 %1055  ;;  %v1047_v3 = vmul.f32 %v2995_v28, %v1030_v37  ;;  %v1048_v5 = vmul.f32 %v2998_v29, %v1031_v52  ;;  %v931_v62 = vmul.f32 %v2982_v22, %v915_v9  ;;  %v932_v1 = vmul.f32 %v2990_v25, %v916_v46  ;;  %v2402_v46 = vld [vmem:[%s3615_s19 + $0xe] sm:$0x3] }
 0x157   : > { %v2963_v12 = vpop.permute.xlu0 %1053  ;;  %v1046_v27 = vmul.f32 %v2998_v29, %v1029_v10  ;;  %v995_v0 = vadd.f32 %v991_v16, %v934_v18 }
 0x158   : > { %v992_v33 = vadd.f32 %v988_v40, %v931_v62 }
 0x15a   : > { %v1062_v13 = vpop.permute.xlu1 %1061 }
 0x15b   : > { %v1060_v15 = vpop.permute.xlu0 %1059  ;;  %v1065_v6 = vsel %vm1063_vm3, %v1062_v13, %v1056_v11  ;;  %v1071_v7 = vsel %vm1063_vm3, %v1056_v11, %v1062_v13  ;;  %v990_v13 = vmul.f32 %v981_v26, %v973_v30  ;;  %v1045_v26 = vmul.f32 %v2995_v28, %v1028_v8 }
 0x15c   : > { %v1064_v38 = vsel %vm1063_vm3, %v1060_v15, %v2963_v12  ;;  %v1070_v14 = vsel %vm1063_vm3, %v2963_v12, %v1060_v15  ;;  %v1087_v34 = vmul.f32 %v2899_v41, %v1071_v7  ;;  %v1088_v48 = vmul.f32 %v2899_v41, %v1065_v6  ;;  %v2399_v41 = vld [vmem:[%s3615_s19 + $0xc] sm:$0x3] }
 0x15d   : > { %v1085_v12 = vmul.f32 %v2901_v42, %v1070_v14  ;;  %v1086_v15 = vmul.f32 %v2901_v42, %v1064_v38  ;;  %v994_v30 = vadd.f32 %v990_v13, %v933_v39  ;;  %v993_v6 = vadd.f32 %v989_v63, %v932_v1 }
 0x15e   : > { %v2979_v21 = vpop.permute.xlu1 %1150  ;;  %v1104_v2 = vmul.f32 %v3010_v35, %v1087_v34  ;;  %v1105_v42 = vmul.f32 %v3013_v36, %v1088_v48  ;;  %v3085_v7 = vrot.slane %v2399_v41, %v2857_v50  ;;  %v3088_v22 = vrot.slane %v2399_v41, %v2853_v45  ;;  %v2405_v34 = vld [vmem:[%s3615_s19 + $0x10] sm:$0x3] }
 0x15f   : > { %v2987_v24 = vpop.permute.xlu0 %1148  ;;  %v1051_v25 = vadd.f32 %v1047_v3, %v994_v30  ;;  %v1052_v28 = vadd.f32 %v1048_v5, %v995_v0  ;;  %v1102_v29 = vmul.f32 %v3010_v35, %v1085_v12  ;;  %v1103_v9 = vmul.f32 %v3013_v36, %v1086_v15 }
 0x160   : > { %v1049_v37 = vadd.f32 %v1045_v26, %v992_v33  ;;  %v1050_v52 = vadd.f32 %v1046_v27, %v993_v6  ;;  %v1157_v35 = vsel %vm1156_vm4, %v2987_v24, %v2979_v21  ;;  %v1165_v36 = vsel %vm1156_vm4, %v2979_v21, %v2987_v24 }
 0x161   : > { %v1108_v14 = vadd.f32 %v1104_v2, %v1051_v25  ;;  %v1109_v13 = vadd.f32 %v1105_v42, %v1052_v28  ;;  %v1304_v48 = vrot.slane %v2402_v46, %v2857_v50  ;;  %v1180_v63 = vmul.f32 %v2945_v54, %v1157_v35 }
 0x162   : > { %v3015_v43 = vpop.permute.xlu1 %1154  ;;  %v1107_v39 = vadd.f32 %v1103_v9, %v1050_v52  ;;  %v1181_v21 = vmul.f32 %v2945_v54, %v1165_v36  ;;  %v1361_v3 = vrot.slane %v2405_v34, %v2857_v50  ;;  %v1365_v5 = vrot.slane %v2405_v34, %v2853_v45 }
 0x163   : > { %v3025_v47 = vpop.permute.xlu0 %1152  ;;  %v1146_v12 = vadd.f32 %v3004_v31, %v1108_v14  ;;  %v1147_v15 = vadd.f32 %v3007_v32, %v1109_v13 }
 0x164   : > { %v1158_v8 = vsel %vm1156_vm4, %v3025_v47, %v3015_v43  ;;  %v1166_v10 = vsel %vm1156_vm4, %v3015_v43, %v3025_v47  ;;  %v1308_v43 = vrot.slane %v2402_v46, %v2853_v45  ;;  %v1106_v47 = vadd.f32 %v1102_v29, %v1049_v37 }
 0x165   : > { %v1182_v18 = vmul.f32 %v2943_v53, %v1158_v8  ;;  %v1183_v40 = vmul.f32 %v2943_v53, %v1166_v10  ;;  %v1145_v32 = vadd.f32 %v3021_v51, %v1107_v39 }
 0x166   : > { %v3043_v23 = vpop.permute.xlu1 %1207  ;;  %v1144_v27 = vadd.f32 %v3018_v44, %v1106_v47 }
 0x167   : > { %v3049_v61 = vpop.permute.xlu0 %1205  ;;  %v1199_v30 = vmul.f32 %v3030_v17, %v1182_v18 }
 0x168   : > { %v1214_v54 = vsel %vm1213_vm5, %v3049_v61, %v3043_v23  ;;  %v1222_v1 = vsel %vm1213_vm5, %v3043_v23, %v3049_v61 }
 0x169   : > { %v1237_v42 = vmul.f32 %v2949_v56, %v1214_v54  ;;  %v1238_v33 = vmul.f32 %v2949_v56, %v1222_v1  ;;  %v3616_v54 = vld [vmem:[#allocation11_spill] sm:$0xff] }
 0x16a   : > { %v3065_v11 = vpop.permute.xlu1 %1211 }
 0x16b   : > { %v1210_v49 = vpop.permute.xlu0 %1209  ;;  %v1254_v8 = vmul.f32 %v3085_v7, %v1237_v42  ;;  %v1255_v10 = vmul.f32 %v3088_v22, %v1238_v33  ;;  %v1562_v33 = vld [vmem:[%s3565_s12] sm:$0xff] }
 0x16c   : > { %v1215_v41 = vsel %vm1213_vm5, %v1210_v49, %v3065_v11  ;;  %v1223_v62 = vsel %vm1213_vm5, %v3065_v11, %v1210_v49  ;;  %v1200_v11 = vmul.f32 %v3033_v20, %v1183_v40 }
 0x16d   : > { %v1239_v49 = vmul.f32 %v2947_v55, %v1215_v41  ;;  %v1240_v0 = vmul.f32 %v2947_v55, %v1223_v62 }
 0x16e   : > { %v1265_v19 = vpop.permute.xlu1 %1264  ;;  %v1204_v14 = vadd.f32 %v1200_v11, %v1147_v15 }
 0x16f   : > { %v1263_v4 = vpop.permute.xlu0 %1262  ;;  %v1256_v46 = vmul.f32 %v3085_v7, %v1239_v49 }
 0x170   : > { %v1271_v2 = vsel %vm1270_vm6, %v1263_v4, %v1265_v19  ;;  %v1279_v61 = vsel %vm1270_vm6, %v1265_v19, %v1263_v4  ;;  %v1197_v19 = vmul.f32 %v3030_v17, %v1180_v63  ;;  %v1198_v4 = vmul.f32 %v3033_v20, %v1181_v21 }
 0x171   : > { %v1294_v9 = vmul.f32 %v2953_v58, %v1271_v2  ;;  %v1295_v56 = vmul.f32 %v2953_v58, %v1279_v61 }
 0x172   : > { %v1269_v38 = vpop.permute.xlu1 %1268  ;;  %v1201_v35 = vadd.f32 %v1197_v19, %v1144_v27  ;;  %v1202_v36 = vadd.f32 %v1198_v4, %v1145_v32  ;;  %v2406_v19 = vld [vmem:[%s3561_s8 + $0x10] sm:$0xff]  ;;  %v2411_v4 = vld [vmem:[%s3561_s8 + $0x20] sm:$0xff] }
 0x173   : > { %v1267_v16 = vpop.permute.xlu0 %1266  ;;  %v1312_v34 = vmul.f32 %v1308_v43, %v1295_v56 }
 0x174   : > { %v1272_v26 = vsel %vm1270_vm6, %v1267_v16, %v1269_v38  ;;  %v1280_v31 = vsel %vm1270_vm6, %v1269_v38, %v1267_v16  ;;  %v1203_v38 = vadd.f32 %v1199_v30, %v1146_v12  ;;  %v1311_v16 = vmul.f32 %v1304_v48, %v1294_v9  ;;  %v2416_v9 = vld [vmem:[%s3561_s8 + $0x30] sm:$0xff] }
 0x175   : > { %v1296_v51 = vmul.f32 %v2951_v57, %v1272_v26  ;;  %v1297_v44 = vmul.f32 %v2951_v57, %v1280_v31  ;;  %v1257_v57 = vmul.f32 %v3088_v22, %v1240_v0  ;;  %v1258_v40 = vadd.f32 %v1254_v8, %v1201_v35  ;;  %v3617_v26 = vld [vmem:[#allocation12_spill] sm:$0xff] }
 0x176   : > { %v1322_v24 = vpop.permute.xlu1 %1321  ;;  %v1260_v47 = vadd.f32 %v1256_v46, %v1203_v38  ;;  %v1259_v7 = vadd.f32 %v1255_v10, %v1202_v36 }
 0x177   : > { %v1320_v53 = vpop.permute.xlu0 %1319  ;;  %v1313_v13 = vmul.f32 %v1304_v48, %v1296_v51  ;;  %v1314_v58 = vmul.f32 %v1308_v43, %v1297_v44  ;;  %v1261_v39 = vadd.f32 %v1257_v57, %v1204_v14  ;;  %v1315_v41 = vadd.f32 %v1311_v16, %v1258_v40  ;;  %v1424_v51 = vld [vmem:[%s3561_s8 + $0x8] sm:$0xff]  ;;  %v2407_v44 = vld [vmem:[%s3561_s8 + $0x18] sm:$0xff] }
 0x178   : > { %v1328_v25 = vsel %vm1327_vm7, %v1320_v53, %v1322_v24  ;;  %v1336_v28 = vsel %vm1327_vm7, %v1322_v24, %v1320_v53 }
 0x179   : > { %v1351_v17 = vmul.f32 %v2957_v60, %v1328_v25  ;;  %v1352_v20 = vmul.f32 %v2957_v60, %v1336_v28  ;;  %v1317_v21 = vadd.f32 %v1313_v13, %v1260_v47  ;;  %v1318_v24 = vadd.f32 %v1314_v58, %v1261_v39  ;;  %v2417_v25 = vld [vmem:[%s3561_s8 + $0x38] sm:$0xff] }
 0x17a   : > { %v1326_v23 = vpop.permute.xlu1 %1325  ;;  %v1316_v60 = vadd.f32 %v1312_v34, %v1259_v7 }
 0x17b   : > { %v1324_v6 = vpop.permute.xlu0 %1323  ;;  %v1368_v63 = vmul.f32 %v1361_v3, %v1351_v17  ;;  %v1369_v22 = vmul.f32 %v1365_v5, %v1352_v20 }
 0x17c   : > { %v1329_v55 = vsel %vm1327_vm7, %v1324_v6, %v1326_v23  ;;  %v1337_v29 = vsel %vm1327_vm7, %v1326_v23, %v1324_v6  ;;  %v2412_v6 = vld [vmem:[%s3561_s8 + $0x28] sm:$0xff] }
 0x17d   : > { %v1353_v37 = vmul.f32 %v2955_v59, %v1329_v55  ;;  %v1354_v52 = vmul.f32 %v2955_v59, %v1337_v29  ;;  %v1373_v62 = vadd.f32 %v1369_v22, %v1316_v60  ;;  %v1372_v53 = vadd.f32 %v1368_v63, %v1315_v41  ;;  %v1423_v55 = vld [vmem:[%s3561_s8] sm:$0xff] }
 0x17f   : > { %v1370_v18 = vmul.f32 %v1361_v3, %v1353_v37  ;;  %v1371_v59 = vmul.f32 %v1365_v5, %v1354_v52  ;;  %v1389_v31 = vmul.f32 %v3617_v26, %v1373_v62  ;;  %v1388_v32 = vmul.f32 %v3617_v26, %v1372_v53 }
 0x181   : > { %v1374_v12 = vadd.f32 %v1370_v18, %v1317_v21  ;;  %v1375_v15 = vadd.f32 %v1371_v59, %v1318_v24 }
 0x183   : > { %v1390_v1 = vmul.f32 %v3616_v54, %v1374_v12  ;;  %v1391_v48 = vmul.f32 %v3616_v54, %v1375_v15 }
 0x18b   : > { %v1402_v43 = vpop.permute.xlu1 %1401 }
 0x18c   : > { %v3164_v27 = vadd.f32 %v1402_v43, %v1390_v1  ;;  %v3166_v3 = vadd.f32 %v1402_v43, %v1391_v48  ;;  %v1397_v5 = vpop.permute.xlu0 %1396 }
 0x18d   : > { %v3168_v30 = vadd.f32 %v1397_v5, %v1388_v32  ;;  %v3170_v11 = vadd.f32 %v1397_v5, %v1389_v31 }
 0x18e   : > { %v1410_v49 = vmax.f32 %v3164_v27, 0.0  ;;  %v1411_v0 = vmax.f32 %v3166_v3, 0.0 }
 0x18f   : > { %v1408_v2 = vmax.f32 %v3168_v30, 0.0  ;;  %v1409_v61 = vmax.f32 %v3170_v11, 0.0 }
 0x190   : > { %v1415_v23 = vadd.f32 %v1411_v0, %v1410_v49 }
 0x191   : > { %v1412_v42 = vadd.f32 %v1409_v61, %v1408_v2 }
 0x192   : > { %1416 = vadd.xlane.f32.xlu1 %v1415_v23  ;;  %v1436_v23 = vld [vmem:[%s3562_s9] sm:$0x1] }
 0x193   : > { %1413 = vadd.xlane.f32.xlu0 %v1412_v42 }
 0x1a3   : > { %1566 = vperm.xlu1 %2508, %v1562_v33   ;;  %v2408_v33 = vld [vmem:[%s3562_s9 + $0x1] sm:$0x1] }
 0x21f   : > { %v1417_v28 = vpop.xlane.xlu1 %1416 }
 0x220   : > { %v1420_v29 = vmul.f32 0.00390625, %v1417_v28  ;;  %v1414_v56 = vpop.xlane.xlu0 %1413 }
 0x221   : > { %v1419_v46 = vmul.f32 0.00390625, %v1414_v56 }
 0x222   : > { %v1426_v57 = vmul.f32 %v1424_v51, %v1420_v29  ;;  %v1453_v37 = vmul.f32 %v2407_v44, %v1420_v29  ;;  %v1482_v52 = vmul.f32 %v2412_v6, %v1420_v29  ;;  %v1511_v8 = vmul.f32 %v2417_v25, %v1420_v29  ;;  %v2413_v51 = vld [vmem:[%s3562_s9 + $0x2] sm:$0x1]  ;;  %v2418_v44 = vld [vmem:[%s3562_s9 + $0x3] sm:$0x1] }
 0x223   : > { %v1425_v10 = vmul.f32 %v1423_v55, %v1419_v46  ;;  %v1452_v17 = vmul.f32 %v2406_v19, %v1419_v46  ;;  %v1481_v20 = vmul.f32 %v2411_v4, %v1419_v46  ;;  %v1510_v38 = vmul.f32 %v2416_v9, %v1419_v46 }
 0x224   : > { %v1428_v14 = vsel %vm1063_vm3, %v1426_v57, 0.0  ;;  %v1455_v13 = vsel %vm1063_vm3, %v1453_v37, 0.0  ;;  %v1484_v58 = vsel %vm1063_vm3, %v1482_v52, 0.0  ;;  %v1513_v35 = vsel %vm1063_vm3, %v1511_v8, 0.0  ;;  %v1440_v37 = vld [vmem:[%s3563_s10 + $0x8] sm:$0xff] }
 0x225   : > { %v1427_v36 = vsel %vm1063_vm3, %v1425_v10, 0.0  ;;  %v1454_v16 = vsel %vm1063_vm3, %v1452_v17, 0.0  ;;  %v1483_v34 = vsel %vm1063_vm3, %v1481_v20, 0.0  ;;  %v1512_v47 = vsel %vm1063_vm3, %v1510_v38, 0.0  ;;  %v1439_v17 = vld [vmem:[%s3563_s10] sm:$0xff]  ;;  %v1422_v20 = vld [vmem:[%s3564_s11 + $0x8] sm:$0xff] }
 0x226   : > { %v1429_v39 = vadd.f32 %v1428_v14, %v1427_v36  ;;  %v1456_v18 = vadd.f32 %v1455_v13, %v1454_v16  ;;  %v1485_v59 = vadd.f32 %v1484_v58, %v1483_v34  ;;  %v1514_v40 = vadd.f32 %v1513_v35, %v1512_v47  ;;  %v2410_v38 = vld [vmem:[%s3563_s10 + $0x18] sm:$0xff]  ;;  %v1421_v58 = vld [vmem:[%s3564_s11] sm:$0xff]  ;;  %v2409_v35 = vld [vmem:[%s3563_s10 + $0x10] sm:$0xff] }
 0x227   : > { %v2415_v36 = vld [vmem:[%s3563_s10 + $0x28] sm:$0xff] }
 0x228   : > { %v1430_v7 = vrot.slane %v1429_v39, 4  ;;  %v1457_v63 = vrot.slane %v1456_v18, 4  ;;  %v1486_v22 = vrot.slane %v1485_v59, 4  ;;  %v1515_v21 = vrot.slane %v1514_v40, 4 }
 0x22a   : > { %v1431_v24 = vadd.f32 %v1430_v7, %v1429_v39  ;;  %v1458_v41 = vadd.f32 %v1457_v63, %v1456_v18  ;;  %v1487_v60 = vadd.f32 %v1486_v22, %v1485_v59  ;;  %v1516_v12 = vadd.f32 %v1515_v21, %v1514_v40  ;;  %v2414_v18 = vld [vmem:[%s3563_s10 + $0x20] sm:$0xff]  ;;  %v2420_v59 = vld [vmem:[%s3563_s10 + $0x38] sm:$0xff]  ;;  %v2419_v21 = vld [vmem:[%s3563_s10 + $0x30] sm:$0xff] }
 0x22c   : > { %v1432_v15 = vrot.slane %v1431_v24, 2  ;;  %v1459_v62 = vrot.slane %v1458_v41, 2  ;;  %v1488_v53 = vrot.slane %v1487_v60, 2  ;;  %v1517_v54 = vrot.slane %v1516_v12, 2 }
 0x22e   : > { %v1433_v1 = vadd.f32 %v1432_v15, %v1431_v24  ;;  %v1460_v48 = vadd.f32 %v1459_v62, %v1458_v41  ;;  %v1489_v43 = vadd.f32 %v1488_v53, %v1487_v60  ;;  %v1518_v26 = vadd.f32 %v1517_v54, %v1516_v12 }
 0x230   : > { %v1434_v31 = vrot.slane %v1433_v1, 1  ;;  %v1461_v32 = vrot.slane %v1460_v48, 1  ;;  %v1490_v5 = vrot.slane %v1489_v43, 1  ;;  %v1519_v42 = vrot.slane %v1518_v26, 1 }
 0x232   : > { %v1435_v6 = vadd.f32 %v1434_v31, %v1433_v1  ;;  %v1462_v25 = vadd.f32 %v1461_v32, %v1460_v48  ;;  %v1491_v28 = vadd.f32 %v1490_v5, %v1489_v43  ;;  %v1520_v55 = vadd.f32 %v1519_v42, %v1518_v26  ;;  %v2423_v42 = vld [vmem:[%s3565_s12 + $0x18] sm:$0xff] }
 0x234   : > { %v1437_v29 = vadd.f32 %v1436_v23, %v1435_v6  ;;  %v1465_v19 = vadd.f32 %v2408_v33, %v1462_v25  ;;  %v1494_v4 = vadd.f32 %v2413_v51, %v1491_v28  ;;  %v1523_v9 = vadd.f32 %v2418_v44, %v1520_v55  ;;  %v2421_v33 = vld [vmem:[%s3565_s12 + $0x8] sm:$0xff]  ;;  %v2422_v44 = vld [vmem:[%s3565_s12 + $0x10] sm:$0xff]  ;;  %v2427_v6 = vld [vmem:[%s3565_s12 + $0x38] sm:$0xff] }
 0x235   : > { %v2425_v51 = vld [vmem:[%s3565_s12 + $0x28] sm:$0xff]  ;;  %v2424_v25 = vld [vmem:[%s3565_s12 + $0x20] sm:$0xff]  ;;  %v2426_v55 = vld [vmem:[%s3565_s12 + $0x30] sm:$0xff] }
 0x236   : > { %v1438_v56 = vmax.f32 %v1437_v29, 0.0  ;;  %v1466_v46 = vmax.f32 %v1465_v19, 0.0  ;;  %v1495_v57 = vmax.f32 %v1494_v4, 0.0  ;;  %v1524_v10 = vmax.f32 %v1523_v9, 0.0  ;;  %v2429_v28 = vld [vmem:[%s3565_s12 + $0x48] sm:$0xff]  ;;  %v2431_v29 = vld [vmem:[%s3565_s12 + $0x58] sm:$0xff] }
 0x237   : > { %v2428_v19 = vld [vmem:[%s3565_s12 + $0x40] sm:$0xff]  ;;  %v2433_v4 = vld [vmem:[%s3565_s12 + $0x68] sm:$0xff]  ;;  %v2430_v9 = vld [vmem:[%s3565_s12 + $0x50] sm:$0xff] }
 0x238   : > { %v1444_v52 = vrot.slane %v1438_v56, %v2857_v50  ;;  %v1473_v8 = vrot.slane %v1466_v46, %v2857_v50  ;;  %v1502_v13 = vrot.slane %v1495_v57, %v2857_v50  ;;  %v1531_v39 = vrot.slane %v1524_v10, %v2857_v50  ;;  %v2435_v56 = vld [vmem:[%s3565_s12 + $0x78] sm:$0xff]  ;;  %v2432_v46 = vld [vmem:[%s3565_s12 + $0x60] sm:$0xff] }
 0x239   : > { %v1952_v57 = vld [vmem:[%s3567_s14] sm:$0xff]  ;;  %v2440_v10 = vld [vmem:[%s3568_s15 + $0x18] sm:$0xff] }
 0x23a   : > { %v1446_v14 = vmul.f32 %v1444_v52, %v1440_v37  ;;  %v1445_v16 = vmul.f32 %v1444_v52, %v1439_v17  ;;  %v1475_v47 = vmul.f32 %v2410_v38, %v1473_v8  ;;  %v1474_v7 = vmul.f32 %v2409_v35, %v1473_v8  ;;  %v2434_v37 = vld [vmem:[%s3565_s12 + $0x70] sm:$0xff]  ;;  %v2436_v52 = vld [vmem:[%s3568_s15 + $0x8] sm:$0xff]  ;;  %v1944_v8 = vld [vmem:[%s3566_s13] sm:$0xff] }
 0x23b   : > { %v1504_v22 = vmul.f32 %v2415_v36, %v1502_v13  ;;  %v1503_v41 = vmul.f32 %v2414_v18, %v1502_v13  ;;  %v1533_v12 = vmul.f32 %v2420_v59, %v1531_v39  ;;  %v1532_v62 = vmul.f32 %v2419_v21, %v1531_v39  ;;  %v1971_v17 = vld [vmem:[%s3568_s15] sm:$0xff]  ;;  %v2438_v38 = vld [vmem:[%s3568_s15 + $0x10] sm:$0xff]  ;;  %v1567_v36 = vpop.permute.xlu1 %1566 }
 0x23c   : > { %v1448_v34 = vadd.f32 %v1446_v14, %v1422_v20  ;;  %v1447_v40 = vadd.f32 %v1445_v16, %v1421_v58  ;;  %v2444_v20 = vld [vmem:[%s3568_s15 + $0x28] sm:$0xff]  ;;  %v2448_v14 = vld [vmem:[%s3568_s15 + $0x38] sm:$0xff]  ;;  %v2442_v13 = vld [vmem:[%s3568_s15 + $0x20] sm:$0xff] }
 0x23d   : > { %v2446_v58 = vld [vmem:[%s3568_s15 + $0x30] sm:$0xff]  ;;  %v2450_v35 = vld [vmem:[%s3568_s15 + $0x40] sm:$0xff] }
 0x23e   : > { %v1477_v63 = vadd.f32 %v1475_v47, %v1448_v34  ;;  %v1476_v24 = vadd.f32 %v1474_v7, %v1447_v40 }
 0x240   : > { %v1506_v60 = vadd.f32 %v1504_v22, %v1477_v63  ;;  %v1505_v15 = vadd.f32 %v1503_v41, %v1476_v24 }
 0x242   : > { %v1535_v53 = vadd.f32 %v1533_v12, %v1506_v60  ;;  %v1534_v54 = vadd.f32 %v1532_v62, %v1505_v15 }
 0x244   : > { %v1537_v1 = vadd.f32 3.0, %v1535_v53  ;;  %v1536_v48 = vadd.f32 3.0, %v1534_v54 }
 0x246   : > { %v1539_v43 = vmax.f32 %v1537_v1, 0.0  ;;  %v1538_v26 = vmax.f32 %v1536_v48, 0.0 }
 0x248   : > { %v1541_v31 = vmin.f32 %v1539_v43, 6.0  ;;  %v1540_v32 = vmin.f32 %v1538_v26, 6.0 }
 0x24a   : > { %v1543_v5 = vmul.f32 0.16666667, %v1541_v31  ;;  %v1542_v23 = vmul.f32 0.16666667, %v1540_v32 }
 0x24c   : > { %1551 = vperm.xlu1 %2508, %v1543_v5   ;;  %1546 = vperm.xlu0 %2507, %v1542_v23  }
 0x250   : > { %1638 = vperm.xlu1 %2508, %v2423_v42   ;;  %1590 = vperm.xlu0 %2507, %v2421_v33  }
 0x254   : > { %1686 = vperm.xlu1 %2508, %v2425_v51   ;;  %1614 = vperm.xlu0 %2507, %v2422_v44  }
 0x258   : > { %1734 = vperm.xlu1 %2508, %v2427_v6   ;;  %1662 = vperm.xlu0 %2507, %v2424_v25  }
 0x25c   : > { %1782 = vperm.xlu1 %2508, %v2429_v28   ;;  %1710 = vperm.xlu0 %2507, %v2426_v55  }
 0x260   : > { %1830 = vperm.xlu1 %2508, %v2431_v29   ;;  %1758 = vperm.xlu0 %2507, %v2428_v19  }
 0x264   : > { %1878 = vperm.xlu1 %2508, %v2433_v4   ;;  %1806 = vperm.xlu0 %2507, %v2430_v9  }
 0x268   : > { %1926 = vperm.xlu1 %2508, %v2435_v56   ;;  %1854 = vperm.xlu0 %2507, %v2432_v46  }
 0x26c   : > { %1955 = vperm.xlu1 %2508, %v1952_v57   ;;  %1902 = vperm.xlu0 %2507, %v2434_v37  }
 0x270   : > { %2008 = vperm.xlu1 %2508, %v2436_v52   ;;  %1947 = vperm.xlu0 %2507, %v1944_v8  }
 0x274   : > { %2076 = vperm.xlu1 %2508, %v2440_v10   ;;  %1974 = vperm.xlu0 %2507, %v1971_v17  }
 0x278   : > { %2135 = vperm.xlu1 %2508, %v2444_v20   ;;  %2042 = vperm.xlu0 %2507, %v2438_v38  }
 0x27c   : > { %2203 = vperm.xlu1 %2508, %v2448_v14   ;;  %2101 = vperm.xlu0 %2507, %v2442_v13  }
 0x280   : > { %2169 = vperm.xlu0 %2507, %v2446_v58  }
 0x284   : > { %2237 = vperm.xlu0 %2507, %v2450_v35  }
 0x2cb   : > { %v1552_v16 = vpop.permute.xlu1 %1551  ;;  %v1547_v39 = vpop.permute.xlu0 %1546 }
 0x2cc   : > { %v1556_v34 = vmul.f32 %v1552_v16, %v1410_v49  ;;  %v1557_v47 = vmul.f32 %v1552_v16, %v1411_v0  ;;  %v1554_v18 = vmul.f32 %v1547_v39, %v1408_v2  ;;  %v1555_v59 = vmul.f32 %v1547_v39, %v1409_v61 }
 0x2ce   : > { %1560 = vst [vmem:[#allocation2 + $0x10] sm:$0xff] %v1556_v34  ;;  %1561 = vst [vmem:[#allocation2 + $0x18] sm:$0xff] %v1557_v47 }
 0x2cf   : > { %1558 = vst [vmem:[#allocation2] sm:$0xff] %v1554_v18  ;;  %1559 = vst [vmem:[#allocation2 + $0x8] sm:$0xff] %v1555_v59  ;;  %v1639_v40 = vpop.permute.xlu1 %1638  ;;  %v1591_v7 = vpop.permute.xlu0 %1590 }
 0x2d3   : > { %v1615_v63 = vpop.permute.xlu0 %1614  ;;  %v1687_v27 = vpop.permute.xlu1 %1686 }
 0x2d5   : > { %v1755_v58 = vld [vmem:[#allocation2 + $0x10] ss:$8 sm:$0x3]  ;;  %v1779_v35 = vld [vmem:[#allocation2 + $0x11] ss:$8 sm:$0x3] }
 0x2d6   : > { %v1563_v22 = vld [vmem:[#allocation2] ss:$8 sm:$0x3]  ;;  %v1587_v0 = vld [vmem:[#allocation2 + $0x1] ss:$8 sm:$0x3] }
 0x2d7   : > { %v1573_v49 = vrot.slane %v1563_v22, %v2857_v50  ;;  %v1577_v3 = vrot.slane %v1563_v22, %v2853_v45  ;;  %v1635_v21 = vld [vmem:[#allocation2 + $0x3] ss:$8 sm:$0x3]  ;;  %v1597_v30 = vrot.slane %v1587_v0, %v2857_v50  ;;  %v1601_v11 = vrot.slane %v1587_v0, %v2853_v45  ;;  %v1611_v2 = vld [vmem:[#allocation2 + $0x2] ss:$8 sm:$0x3]  ;;  %v1663_v61 = vpop.permute.xlu0 %1662  ;;  %v1735_v31 = vpop.permute.xlu1 %1734 }
 0x2d8   : > { %v1659_v15 = vld [vmem:[#allocation2 + $0x4] ss:$8 sm:$0x3]  ;;  %v1645_v62 = vrot.slane %v1635_v21, %v2857_v50  ;;  %v1649_v53 = vrot.slane %v1635_v21, %v2853_v45  ;;  %v1683_v54 = vld [vmem:[#allocation2 + $0x5] ss:$8 sm:$0x3]  ;;  %v1621_v1 = vrot.slane %v1611_v2, %v2857_v50  ;;  %v1625_v48 = vrot.slane %v1611_v2, %v2853_v45 }
 0x2d9   : > { %v1580_v24 = vmul.f32 %v1573_v49, %v1567_v36  ;;  %v1581_v41 = vmul.f32 %v1577_v3, %v1567_v36  ;;  %v1604_v60 = vmul.f32 %v1597_v30, %v1591_v7  ;;  %v1605_v12 = vmul.f32 %v1601_v11, %v1591_v7  ;;  %v1731_v29 = vld [vmem:[#allocation2 + $0x7] ss:$8 sm:$0x3]  ;;  %v1707_v19 = vld [vmem:[#allocation2 + $0x6] ss:$8 sm:$0x3] }
 0x2da   : > { %v1628_v5 = vmul.f32 %v1621_v1, %v1615_v63  ;;  %v1629_v23 = vmul.f32 %v1625_v48, %v1615_v63  ;;  %v1669_v42 = vrot.slane %v1659_v15, %v2857_v50  ;;  %v1673_v33 = vrot.slane %v1659_v15, %v2853_v45  ;;  %v1803_v0 = vld [vmem:[#allocation2 + $0x12] ss:$8 sm:$0x3]  ;;  %v1827_v21 = vld [vmem:[#allocation2 + $0x13] ss:$8 sm:$0x3] }
 0x2db   : > { %v1606_v43 = vadd.f32 %v1604_v60, %v1580_v24  ;;  %v1607_v26 = vadd.f32 %v1605_v12, %v1581_v41  ;;  %v1711_v32 = vpop.permute.xlu0 %1710  ;;  %v1693_v51 = vrot.slane %v1683_v54, %v2857_v50  ;;  %v1697_v44 = vrot.slane %v1683_v54, %v2853_v45  ;;  %v1783_v17 = vpop.permute.xlu1 %1782  ;;  %v1851_v1 = vld [vmem:[#allocation2 + $0x14] ss:$8 sm:$0x3] }
 0x2dc   : > { %v1652_v6 = vmul.f32 %v1645_v62, %v1639_v40  ;;  %v1653_v25 = vmul.f32 %v1649_v53, %v1639_v40  ;;  %v1676_v46 = vmul.f32 %v1669_v42, %v1663_v61  ;;  %v1677_v57 = vmul.f32 %v1673_v33, %v1663_v61 }
 0x2dd   : > { %v1630_v28 = vadd.f32 %v1628_v5, %v1606_v43  ;;  %v1631_v55 = vadd.f32 %v1629_v23, %v1607_v26  ;;  %v1700_v37 = vmul.f32 %v1693_v51, %v1687_v27  ;;  %v1701_v52 = vmul.f32 %v1697_v44, %v1687_v27  ;;  %v1875_v43 = vld [vmem:[#allocation2 + $0x15] ss:$8 sm:$0x3] }
 0x2de   : > { %v1741_v8 = vrot.slane %v1731_v29, %v2857_v50  ;;  %v1745_v10 = vrot.slane %v1731_v29, %v2853_v45  ;;  %v1717_v14 = vrot.slane %v1707_v19, %v2857_v50  ;;  %v1721_v13 = vrot.slane %v1707_v19, %v2853_v45  ;;  %v1899_v29 = vld [vmem:[#allocation2 + $0x16] ss:$8 sm:$0x3]  ;;  %v1923_v19 = vld [vmem:[#allocation2 + $0x17] ss:$8 sm:$0x3] }
 0x2df   : > { %v1759_v4 = vpop.permute.xlu0 %1758  ;;  %v1654_v9 = vadd.f32 %v1652_v6, %v1630_v28  ;;  %v1655_v56 = vadd.f32 %v1653_v25, %v1631_v55  ;;  %v1765_v63 = vrot.slane %v1755_v58, %v2857_v50  ;;  %v1769_v22 = vrot.slane %v1755_v58, %v2853_v45  ;;  %v1831_v3 = vpop.permute.xlu1 %1830 }
 0x2e0   : > { %v1724_v34 = vmul.f32 %v1717_v14, %v1711_v32  ;;  %v1725_v47 = vmul.f32 %v1721_v13, %v1711_v32  ;;  %v1748_v39 = vmul.f32 %v1741_v8, %v1735_v31  ;;  %v1749_v18 = vmul.f32 %v1745_v10, %v1735_v31 }
 0x2e1   : > { %v1678_v20 = vadd.f32 %v1676_v46, %v1654_v9  ;;  %v1679_v38 = vadd.f32 %v1677_v57, %v1655_v56  ;;  %v1789_v27 = vrot.slane %v1779_v35, %v2857_v50  ;;  %v1793_v49 = vrot.slane %v1779_v35, %v2853_v45 }
 0x2e2   : > { %v1772_v2 = vmul.f32 %v1765_v63, %v1759_v4  ;;  %v1773_v61 = vmul.f32 %v1769_v22, %v1759_v4  ;;  %v1813_v15 = vrot.slane %v1803_v0, %v2857_v50  ;;  %v1817_v62 = vrot.slane %v1803_v0, %v2853_v45  ;;  %v2266_v0 = vld [vmem:[%s3570_s17] sm:$0xff] }
 0x2e3   : > { %v1702_v36 = vadd.f32 %v1700_v37, %v1678_v20  ;;  %v1703_v16 = vadd.f32 %v1701_v52, %v1679_v38  ;;  %v1807_v59 = vpop.permute.xlu0 %1806  ;;  %v1796_v24 = vmul.f32 %v1789_v27, %v1783_v17  ;;  %v1797_v41 = vmul.f32 %v1793_v49, %v1783_v17  ;;  %v1879_v33 = vpop.permute.xlu1 %1878 }
 0x2e4   : > { %v1837_v53 = vrot.slane %v1827_v21, %v2857_v50  ;;  %v1841_v54 = vrot.slane %v1827_v21, %v2853_v45  ;;  %v1820_v32 = vmul.f32 %v1813_v15, %v1807_v59  ;;  %v1821_v5 = vmul.f32 %v1817_v62, %v1807_v59  ;;  %v2258_v21 = vld [vmem:[%s3569_s16] sm:$0xff] }
 0x2e5   : > { %v1726_v40 = vadd.f32 %v1724_v34, %v1702_v36  ;;  %v1727_v7 = vadd.f32 %v1725_v47, %v1703_v16  ;;  %v1861_v6 = vrot.slane %v1851_v1, %v2857_v50  ;;  %v1865_v25 = vrot.slane %v1851_v1, %v2853_v45 }
 0x2e6   : > { %v1844_v23 = vmul.f32 %v1837_v53, %v1831_v3  ;;  %v1845_v42 = vmul.f32 %v1841_v54, %v1831_v3  ;;  %v1885_v28 = vrot.slane %v1875_v43, %v2857_v50  ;;  %v1889_v55 = vrot.slane %v1875_v43, %v2853_v45 }
 0x2e7   : > { %v1750_v30 = vadd.f32 %v1748_v39, %v1726_v40  ;;  %v1751_v11 = vadd.f32 %v1749_v18, %v1727_v7  ;;  %v1855_v48 = vpop.permute.xlu0 %1854  ;;  %v1909_v17 = vrot.slane %v1899_v29, %v2857_v50  ;;  %v1913_v20 = vrot.slane %v1899_v29, %v2853_v45  ;;  %v1927_v13 = vpop.permute.xlu1 %1926 }
 0x2e8   : > { %v1868_v56 = vmul.f32 %v1861_v6, %v1855_v48  ;;  %v1869_v46 = vmul.f32 %v1865_v25, %v1855_v48  ;;  %v1892_v57 = vmul.f32 %v1885_v28, %v1879_v33  ;;  %v1893_v37 = vmul.f32 %v1889_v55, %v1879_v33 }
 0x2e9   : > { %v1774_v60 = vadd.f32 %v1772_v2, %v1750_v30  ;;  %v1775_v12 = vadd.f32 %v1773_v61, %v1751_v11  ;;  %v1933_v38 = vrot.slane %v1923_v19, %v2857_v50  ;;  %v1937_v14 = vrot.slane %v1923_v19, %v2853_v45 }
 0x2eb   : > { %v1798_v26 = vadd.f32 %v1796_v24, %v1774_v60  ;;  %v1799_v31 = vadd.f32 %v1797_v41, %v1775_v12  ;;  %v1903_v52 = vpop.permute.xlu0 %1902  ;;  %v1940_v34 = vmul.f32 %v1933_v38, %v1927_v13  ;;  %v1941_v47 = vmul.f32 %v1937_v14, %v1927_v13  ;;  %v1956_v27 = vpop.permute.xlu1 %1955 }
 0x2ec   : > { %v1916_v36 = vmul.f32 %v1909_v17, %v1903_v52  ;;  %v1917_v16 = vmul.f32 %v1913_v20, %v1903_v52 }
 0x2ed   : > { %v1822_v51 = vadd.f32 %v1820_v32, %v1798_v26  ;;  %v1823_v44 = vadd.f32 %v1821_v5, %v1799_v31  ;;  %v1979_v26 = vld [vmem:[%s3615_s19] sm:$0x3]  ;;  %v2437_v5 = vld [vmem:[%s3615_s19 + $0x2] sm:$0x3] }
 0x2ee   : > { %v1984_v33 = vrot.slane %v1979_v26, %v2857_v50 }
 0x2ef   : > { %v1846_v4 = vadd.f32 %v1844_v23, %v1822_v51  ;;  %v1847_v9 = vadd.f32 %v1845_v42, %v1823_v44  ;;  %v1948_v7 = vpop.permute.xlu0 %1947  ;;  %v2009_v11 = vpop.permute.xlu1 %2008  ;;  %v1988_v51 = vrot.slane %v1979_v26, %v2853_v45  ;;  %v2439_v44 = vld [vmem:[%s3615_s19 + $0x4] sm:$0x3] }
 0x2f0   : > { %v2056_v52 = vrot.slane %v2439_v44, %v2853_v45 }
 0x2f1   : > { %v1870_v8 = vadd.f32 %v1868_v56, %v1846_v4  ;;  %v1871_v10 = vadd.f32 %v1869_v46, %v1847_v9  ;;  %v2018_v4 = vrot.slane %v2437_v5, %v2857_v50  ;;  %v2022_v9 = vrot.slane %v2437_v5, %v2853_v45 }
 0x2f3   : > { %v1894_v58 = vadd.f32 %v1892_v57, %v1870_v8  ;;  %v1895_v35 = vadd.f32 %v1893_v37, %v1871_v10  ;;  %v1975_v30 = vpop.permute.xlu0 %1974  ;;  %v2077_v61 = vpop.permute.xlu1 %2076  ;;  %v2441_v57 = vld [vmem:[%s3615_s19 + $0x6] sm:$0x3]  ;;  %v2052_v37 = vrot.slane %v2439_v44, %v2857_v50 }
 0x2f4   : > { %v2086_v13 = vrot.slane %v2441_v57, %v2857_v50 }
 0x2f5   : > { %v1918_v39 = vadd.f32 %v1916_v36, %v1894_v58  ;;  %v1919_v18 = vadd.f32 %v1917_v16, %v1895_v35  ;;  %v2090_v58 = vrot.slane %v2441_v57, %v2853_v45  ;;  %v2443_v16 = vld [vmem:[%s3615_s19 + $0x8] sm:$0x3] }
 0x2f7   : > { %v1942_v59 = vadd.f32 %v1940_v34, %v1918_v39  ;;  %v1943_v40 = vadd.f32 %v1941_v47, %v1919_v18  ;;  %v2043_v2 = vpop.permute.xlu0 %2042  ;;  %v3425_v41 = vpop.permute.xlu1 %2135 }
 0x2f9   : > { %v1950_v63 = vmul.f32 %v1948_v7, %v1942_v59  ;;  %v1951_v22 = vmul.f32 %v1948_v7, %v1943_v40 }
 0x2fb   : > { %v3383_v49 = vadd.f32 %v1956_v27, %v1950_v63  ;;  %v3385_v3 = vadd.f32 %v1956_v27, %v1951_v22  ;;  %v2102_v24 = vpop.permute.xlu0 %2101  ;;  %v3429_v12 = vpop.permute.xlu1 %2203  ;;  %v2111_v22 = vrot.slane %v2443_v16, %v2857_v50  ;;  %v2115_v27 = vrot.slane %v2443_v16, %v2853_v45 }
 0x2fd   : > { %1961 = vrot.lane.b32.xlu0 %v3385_v3, %s3618_s3  ;;  %1965 = vrot.lane.b32.xlu1 %v3383_v49, %s3618_s3  ;;  %s566_s3 = sand.u32 1, %s2563_s28  }
 0x2ff   : > { %v3427_v60 = vpop.permute.xlu0 %2169 }
 0x301   : > { %1995 = vrot.lane.b32.xlu0 %v3385_v3, %s3619_s4  ;;  %1998 = vrot.lane.b32.xlu1 %v3383_v49, %s3619_s4  ;;  %s2358_s4 = sshll.u32 %s566_s3, 4 }
 0x303   : > { %v3431_v15 = vpop.permute.xlu0 %2237 }
 0x305   : > { %2032 = vrot.lane.b32.xlu0 %v3383_v49, %s3620_s29  ;;  %2029 = vrot.lane.b32.xlu1 %v3385_v3, %s3620_s29  ;;  %s2458_s29 = sshll.u32 %s2699_s0, 8 }
 0x309   : > { %2063 = vrot.lane.b32.xlu0 %v3385_v3, %s3621_s1  ;;  %2066 = vrot.lane.b32.xlu1 %v3383_v49, %s3621_s1  ;;  %s568_s1 = scalar_lea.vmem [#allocation3], %s2358_s4  ;;  %s2515_s4 = scalar_lea.vmem %s2514_s25, 512 }
 0x30d   : > { %2122 = vrot.lane.b32.xlu0 %v3383_v49, %s3622_s24  ;;  %2124 = vrot.lane.b32.xlu1 %v3385_v3, %s3622_s24  ;;  %s2295_s24 = sshll.u32 %s568_s1, 4  ;;  %s3513_s24 = int_to_ptr.vmem [resolvable:$true] %s2295_s24 }
 0x30e   : > { %s2509_s0 = scalar_lea.vmem %s3513_s24, 256  ;;  %p2516_p0 = scmp.lt.s32.totalorder %s3513_s24, %s2514_s25 }
 0x30f   : > { %p2510_p11 = scmp.ne.s32.totalorder %s3513_s24, %s2509_s0  ;;  %p2517_p1 = scmp.lt.s32.totalorder %s2515_s4, %s2509_s0 }
 0x311   : > { %2158 = vrot.lane.b32.xlu0 %v3385_v3, %s3623_s27  ;;  %2156 = vrot.lane.b32.xlu1 %v3383_v49, %s3623_s27  ;;  %p2511_p12 = pnand %p2510_p11, %p2716_p5  ;;  %p2518_p2 = por %p2517_p1, %p2516_p0 }
 0x313   : > { %p2512_p13 = pneg %p2511_p12 }
 0x315   : > { %2192 = vrot.lane.b32.xlu0 %v3385_v3, %s3624_s21  ;;  %2190 = vrot.lane.b32.xlu1 %v3383_v49, %s3624_s21  ;;  %p2519_p3 = pnand %p2518_p2, %p2512_p13 }
 0x319   : > { %2226 = vrot.lane.b32.xlu0 %v3385_v3, %s3625_s22  ;;  %2224 = vrot.lane.b32.xlu1 %v3383_v49, %s3625_s22  ;;  %s3511_s22 = scalar_lea.hbm %s3571_s18, %s2458_s29 }
 0x31d   : > { %2269 = vperm.xlu0 %2507, %v2266_v0   ;;  %2261 = vperm.xlu1 %2508, %v2258_v21   ;;  %v2104_v0 = vmul.f32 %v2102_v24, %v3383_v49  ;;  %v2105_v21 = vmul.f32 %v2102_v24, %v3385_v3  ;;  %v2447_v3 = vld [vmem:[%s3615_s19 + $0xc] sm:$0x3] }
 0x31f   : > { %v2119_v49 = vmul.f32 %v2115_v27, %v2105_v21  ;;  %v2274_v21 = vld [vmem:[%s2851_s20] sm:$0xff] }
 0x36f   : > { %v1966_v62 = vpop.permute.xlu1 %1965  ;;  %v1962_v53 = vpop.permute.xlu0 %1961 }
 0x370   : > { %v1967_v6 = vsel %vm894_vm0, %v1966_v62, %v1962_v53  ;;  %v1970_v25 = vsel %vm894_vm0, %v1962_v53, %v1966_v62 }
 0x371   : > { %v1977_v17 = vmul.f32 %v1975_v30, %v1970_v25  ;;  %v1978_v20 = vmul.f32 %v1975_v30, %v1967_v6 }
 0x373   : > { %v1999_v54 = vpop.permute.xlu1 %1998  ;;  %v1996_v1 = vpop.permute.xlu0 %1995  ;;  %v1991_v59 = vmul.f32 %v1984_v33, %v1977_v17  ;;  %v1992_v40 = vmul.f32 %v1988_v51, %v1978_v20 }
 0x374   : > { %v2000_v23 = vsel %vm949_vm1, %v1999_v54, %v1996_v1  ;;  %v2003_v42 = vsel %vm949_vm1, %v1996_v1, %v1999_v54 }
 0x375   : > { %v2011_v56 = vmul.f32 %v2009_v11, %v2003_v42  ;;  %v2012_v46 = vmul.f32 %v2009_v11, %v2000_v23  ;;  %v2449_v42 = vld [vmem:[%s3615_s19 + $0xe] sm:$0x3] }
 0x376   : > { %v2217_v57 = vrot.slane %v2449_v42, %v2853_v45 }
 0x377   : > { %v2030_v48 = vpop.permute.xlu1 %2029  ;;  %v2033_v43 = vpop.permute.xlu0 %2032  ;;  %v2025_v34 = vmul.f32 %v2018_v4, %v2011_v56  ;;  %v2026_v47 = vmul.f32 %v2022_v9, %v2012_v46  ;;  %v2213_v46 = vrot.slane %v2449_v42, %v2857_v50 }
 0x378   : > { %v2034_v28 = vsel %vm1006_vm2, %v2033_v43, %v2030_v48  ;;  %v2037_v55 = vsel %vm1006_vm2, %v2030_v48, %v2033_v43  ;;  %v2445_v48 = vld [vmem:[%s3615_s19 + $0xa] sm:$0x3] }
 0x379   : > { %v2045_v38 = vmul.f32 %v2043_v2, %v2037_v55  ;;  %v2046_v14 = vmul.f32 %v2043_v2, %v2034_v28  ;;  %v2027_v2 = vadd.f32 %v2025_v34, %v1991_v59  ;;  %v2028_v62 = vadd.f32 %v2026_v47, %v1992_v40 }
 0x37a   : > { %v2145_v33 = vrot.slane %v2445_v48, %v2857_v50  ;;  %v2149_v51 = vrot.slane %v2445_v48, %v2853_v45  ;;  %v2179_v55 = vrot.slane %v2447_v3, %v2857_v50 }
 0x37b   : > { %v2067_v31 = vpop.permute.xlu1 %2066  ;;  %v2064_v32 = vpop.permute.xlu0 %2063  ;;  %v2059_v7 = vmul.f32 %v2052_v37, %v2045_v38  ;;  %v2060_v63 = vmul.f32 %v2056_v52, %v2046_v14 }
 0x37c   : > { %v2068_v8 = vsel %vm1063_vm3, %v2067_v31, %v2064_v32  ;;  %v2071_v10 = vsel %vm1063_vm3, %v2064_v32, %v2067_v31  ;;  %v2118_v31 = vmul.f32 %v2111_v22, %v2104_v0 }
 0x37d   : > { %v2079_v39 = vmul.f32 %v2077_v61, %v2071_v10  ;;  %v2080_v18 = vmul.f32 %v2077_v61, %v2068_v8  ;;  %v2061_v1 = vadd.f32 %v2059_v7, %v2027_v2  ;;  %v2062_v61 = vadd.f32 %v2060_v63, %v2028_v62 }
 0x37f   : > { %v2125_v29 = vpop.permute.xlu1 %2124  ;;  %v2123_v19 = vpop.permute.xlu0 %2122  ;;  %v2093_v53 = vmul.f32 %v2086_v13, %v2079_v39  ;;  %v2094_v54 = vmul.f32 %v2090_v58, %v2080_v18 }
 0x380   : > { %v2126_v43 = vsel %vm1156_vm4, %v2123_v19, %v2125_v29  ;;  %v2130_v26 = vsel %vm1156_vm4, %v2125_v29, %v2123_v19  ;;  %v2183_v29 = vrot.slane %v2447_v3, %v2853_v45 }
 0x381   : > { %v2095_v24 = vadd.f32 %v2093_v53, %v2061_v1  ;;  %v2096_v32 = vadd.f32 %v2094_v54, %v2062_v61  ;;  %v2138_v44 = vmul.f32 %v3425_v41, %v2126_v43  ;;  %v2139_v6 = vmul.f32 %v3425_v41, %v2130_v26  ;;  %v2451_v41 = vld [vmem:[%s3615_s19 + $0x10] sm:$0x3] }
 0x382   : > { %v2247_v14 = vrot.slane %v2451_v41, %v2857_v50  ;;  %v2251_v13 = vrot.slane %v2451_v41, %v2853_v45 }
 0x383   : > { %v2157_v35 = vpop.permute.xlu1 %2156  ;;  %v2159_v36 = vpop.permute.xlu0 %2158  ;;  %v2120_v37 = vadd.f32 %v2118_v31, %v2095_v24  ;;  %v2121_v52 = vadd.f32 %v2119_v49, %v2096_v32  ;;  %v2152_v17 = vmul.f32 %v2145_v33, %v2138_v44  ;;  %v2153_v20 = vmul.f32 %v2149_v51, %v2139_v6 }
 0x384   : > { %v2160_v5 = vsel %vm1213_vm5, %v2157_v35, %v2159_v36  ;;  %v2164_v23 = vsel %vm1213_vm5, %v2159_v36, %v2157_v35 }
 0x385   : > { %v2172_v9 = vmul.f32 %v3427_v60, %v2160_v5  ;;  %v2173_v56 = vmul.f32 %v3427_v60, %v2164_v23  ;;  %v2154_v34 = vadd.f32 %v2152_v17, %v2120_v37  ;;  %v2155_v47 = vadd.f32 %v2153_v20, %v2121_v52 }
 0x387   : > { %v2191_v30 = vpop.permute.xlu1 %2190  ;;  %v2193_v11 = vpop.permute.xlu0 %2192  ;;  %v2186_v58 = vmul.f32 %v2179_v55, %v2172_v9  ;;  %v2187_v35 = vmul.f32 %v2183_v29, %v2173_v56 }
 0x388   : > { %v2194_v19 = vsel %vm1270_vm6, %v2191_v30, %v2193_v11  ;;  %v2198_v4 = vsel %vm1270_vm6, %v2193_v11, %v2191_v30  ;;  %v2275_v30 = vld [vmem:[%s2851_s20 + $0x8] sm:$0xff]  ;;  %s2281_s20 = scalar_lea.sflag [#allocation4], %s566_s3 }
 0x389   : > { %v2206_v38 = vmul.f32 %v3429_v12, %v2194_v19  ;;  %v2207_v60 = vmul.f32 %v3429_v12, %v2198_v4  ;;  %v2188_v59 = vadd.f32 %v2186_v58, %v2154_v34  ;;  %v2189_v12 = vadd.f32 %v2187_v35, %v2155_v47 }
 0x38b   : > { %v2225_v25 = vpop.permute.xlu1 %2224  ;;  %v2227_v28 = vpop.permute.xlu0 %2226  ;;  %v2220_v39 = vmul.f32 %v2213_v46, %v2206_v38  ;;  %v2221_v18 = vmul.f32 %v2217_v57, %v2207_v60 }
 0x38c   : > { %v2228_v8 = vsel %vm1327_vm7, %v2225_v25, %v2227_v28  ;;  %v2232_v10 = vsel %vm1327_vm7, %v2227_v28, %v2225_v25 }
 0x38d   : > { %v2240_v36 = vmul.f32 %v3431_v15, %v2228_v8  ;;  %v2241_v16 = vmul.f32 %v3431_v15, %v2232_v10  ;;  %v2222_v45 = vadd.f32 %v2220_v39, %v2188_v59  ;;  %v2223_v7 = vadd.f32 %v2221_v18, %v2189_v12 }
 0x38f   : > { %v2254_v40 = vmul.f32 %v2247_v14, %v2240_v36  ;;  %v2255_v50 = vmul.f32 %v2251_v13, %v2241_v16 }
 0x391   : > { %v2256_v63 = vadd.f32 %v2254_v40, %v2222_v45  ;;  %v2257_v22 = vadd.f32 %v2255_v50, %v2223_v7 }
 0x39c   : > { %v2262_v27 = vpop.permute.xlu1 %2261  ;;  %v2270_v11 = vpop.permute.xlu0 %2269 }
 0x39d   : > { %v2264_v0 = vmul.f32 %v2262_v27, %v2256_v63  ;;  %v2265_v15 = vmul.f32 %v2262_v27, %v2257_v22 }
 0x39f   : > { %v2272_v2 = vadd.f32 %v2270_v11, %v2264_v0  ;;  %v2273_v62 = vadd.f32 %v2270_v11, %v2265_v15 }
 0x3a1   : > { %v2276_v53 = vadd.f32 %v2274_v21, %v2272_v2  ;;  %v2277_v54 = vadd.f32 %v2275_v30, %v2273_v62 }
 0x3a3   : > { %2278 = vst [vmem:[%s568_s1] sm:$0xff] %v2276_v53  ;;  %2279 = vst [vmem:[%s568_s1 + $0x8] sm:$0xff] %v2277_v54 }
 0x3a4   : > { %2522 = shalt.err (!%p2519_p3)
}
 0x3a5   : > { %s2523_s3 = scalar_lea.hbm %s3511_s22, 256  ;;  %s2527_s27 = scalar_lea.hbm %s3571_s18, 512 }
 0x3a6   : > { %p2524_p4 = scmp.ne.s32.totalorder %s3511_s22, %s2523_s3  ;;  %p2528_p9 = scmp.lt.u32.totalorder %s3511_s22, %s3571_s18 }
 0x3a7   : > { %p2529_p10 = scmp.lt.u32.totalorder %s2527_s27, %s2523_s3  ;;  %p2531_p12 = scmp.lt.u32.totalorder %s2523_s3, %s3511_s22 }
 0x3a8   : > { %p2525_p7 = pnand %p2524_p4, %p2716_p5 }
 0x3a9   : > { %p2530_p11 = por %p2529_p10, %p2528_p9 }
 0x3aa   : > { %p2526_p8 = pneg %p2525_p7 }
 0x3ab   : > { %p2532_p13 = por %p2531_p12, %p2530_p11 }
 0x3ad   : > { %p2533_p0 = pnand %p2532_p13, %p2526_p8 }
 0x3af   : > { %2536 = shalt.err (!%p2533_p0)
}
 0x3b0   : > { %2459 = dma.vmem_to_hbm [thread:$0]  (%p2716_p5), %s3513_s24, 256, %s3511_s22, %s2281_s20  }
 0x3b1 PF: > { %s3626_s0 = sld [smem:[#allocation6_spill]]  ;;  %p2465_p1 = scmp.ge.s32.totalorder %s2571_s30, 2 }
 0x3b3   : > { %p2462_p2 = pnand %p2465_p1, %p2720_p6 }
 0x3b7   : > { %s2307_s4 = sand.u32 1, %s3626_s0  }
 0x3b8   : > { %s2308_s29 = scalar_lea.sflag [#allocation4], %s2307_s4 }
 0x3b9   : > { %2554 = dma.done.wait (!%p2462_p2), %s2308_s29, 256  }
 0x3ba   : > { %2556 = vsyncadd (!%p2462_p2), %s2308_s29, 4294967040  ;;  %s3628_s30 = sld [smem:[#allocation8_spill]]  ;;  %s3629_s3 = sld [smem:[#allocation7_spill]] }
 0x3bb   : > { %s3630_s29 = sld [smem:[#allocation9_spill]]  ;;  %s3631_s27 = smov %s2563_s28 }
 0x3c0   : > { %p28_p3 = scmp.ge.s32.totalorder %s3628_s30, 4   ;;  %s3632_s28 = smov %s3629_s3 }
 0x3c2   :  { %30 = sbr.rel (!%p28_p3) target bundleno = 9 (0x9), region = 204 }
 0x3c9   :  { %2313 = vsyncpa [#allocation4], 1 }
 0x3ca   :  { %2315 = vsyncpa [#allocation4 + $0x1], 1 }

</bundles_post_ra>
